<compile_context>
chip_gen: v7x
topology: tpu7x:2x2x1
jax: 0.10.0
libtpu: 0.0.40
codegen_flags: <defaults>
</compile_context>

<pallas_src>
import functools
import math

import jax
import jax.numpy as jnp
import numpy as np
from jax.experimental import pallas as pl
from jax.experimental.pallas import tpu as pltpu

_LANE = 128
_SUBLANE = 8


# ---------------------------------------------------------------------------
# Kernel
# ---------------------------------------------------------------------------
def _emb_kernel(n_per_group, x_ref, w1_ref, b1_ref, w2p_ref, w2r_ref, b2_ref,
                w3_ref, b3_ref, out_ref):
    """One grid step: scores for a slab of R = bb*N flattened rows.

    x_ref  : (R, D)   input rows (N consecutive rows per batch element)
    w1_ref : (D, D)   mlp_1 weight          b1_ref : (1, D)
    w2p_ref: (D, H)   mlp_2 weight, 'present' half of the folded concat
    w2r_ref: (D, H)   mlp_2 weight, 'rest' half
    b2_ref : (1, H)   w3_ref : (1, H)       b3_ref : (1,) scalar in SMEM
    out_ref: (1, G, 128) lane-dense sigmoid scores, G = R // 128
    """
    R, D = x_ref.shape
    H = w2p_ref.shape[1]
    N = n_per_group
    bb = R // N                      # batch elements (groups) in this slab
    G = R // _LANE                   # lane-dense output rows

    # mlp_1: Linear(D -> D) + Tanh over all R rows in one dense MXU matmul.
    new_data = jnp.tanh(
        jnp.dot(x_ref[...], w1_ref[...], preferred_element_type=jnp.float32)
        + b1_ref[...])                                         # (R, D) f32

    # mlp_2 layer 1 with the concat folded into two matmuls:
    #  * 'rest' contribution for ALL rows (row 0 of each group is wasted work
    #    but keeps the matmul dense on the MXU),
    nd_mm = new_data.astype(w2r_ref.dtype)
    rest_h = jnp.dot(nd_mm, w2r_ref[...],
                     preferred_element_type=jnp.float32)       # (R, H)
    #  * 'present' contribution computed once per group and broadcast over its
    #    N rows (N is sublane-aligned, so the row-0 slice stays cheap).
    present = new_data.reshape(bb, N, D)[:, 0, :]              # (bb, D) f32
    pres_h = (jnp.dot(present.astype(w2p_ref.dtype), w2p_ref[...],
                      preferred_element_type=jnp.float32)
              + b2_ref[...])                                   # (bb, H)
    h = jnp.tanh(rest_h.reshape(bb, N, H) + pres_h[:, None, :])  # (bb, N, H)

    # mlp_2 layer 2: Linear(H -> 1) + Sigmoid as a VPU multiply + XLU lane
    # reduce.  The reduce runs on a (G, 128, H) view (layout-preserving
    # reshape) so the result lands directly in a lane-dense (G, 128) layout
    # and the writeback uses full-width unmasked vector stores.
    prod = h * w3_ref[...]                                     # (bb, N, H)
    logit = jnp.sum(prod.reshape(G, _LANE, H), axis=-1) + b3_ref[0]  # (G, 128)
    out_ref[0] = jax.nn.sigmoid(logit)


# ---------------------------------------------------------------------------
# Sizing helpers
# ---------------------------------------------------------------------------
def _round_up(a, m):
    return -(-a // m) * m


def _tpu_vmem_profile():
    """Returns (per-core VMEM capacity bytes, assume-multi-TensorCore chip)."""
    cap = None
    try:
        cap = getattr(pltpu.get_tpu_info(), "vmem_capacity_bytes", None)
    except Exception:
        cap = None
    if not cap:
        cap = 64 * 1024 * 1024            # conservative fallback (v7x per-TC)
    # v7x: 64 MiB VMEM per TensorCore and 2 TCs/chip -> smaller slabs plus
    # >=2 grid steps on the "parallel" axis.  v5e/v6e: 128 MiB, single TC.
    multi_tc = cap <= 64 * 1024 * 1024
    return cap, multi_tc


def _choose_block_rows(total_rows, N, D, H, in_itemsize, vmem_budget,
                       multi_tc, max_rows=32768):
    """Rows of the flattened (B*N, D) stream processed per grid step.

    The estimate rounds D and H up to the 128-lane vreg width (arrays with a
    short last dim still occupy full 128-lane tiles in VMEM) and charges the
    double-buffered input/output blocks plus the (double-buffered) weights.
    The result is a multiple of lcm(N, 128): groups never straddle a slab and
    the output stays lane-dense.
    """
    Dp = _round_up(max(D, _LANE), _LANE)
    Hp = _round_up(max(H, _LANE), _LANE)
    per_row = (2 * in_itemsize * Dp      # x slab (double-buffered)
               + 4 * Dp                  # new_data (f32)
               + 4 * 4 * Hp              # rest_h, h, h*w3 (+ relayout margin)
               + 16)                     # lane-dense logits / out (x2 buffers)
    fixed = 2 * in_itemsize * (Dp * Dp + 2 * Dp * Hp) + 64 * 1024
    gran = N * _LANE // math.gcd(N, _LANE)           # lcm(N, 128)
    rows = max((vmem_budget - fixed) // per_row, gran)
    rows = max(gran, rows // gran * gran)
    rows = min(rows, max(gran, max_rows // gran * gran))
    if multi_tc and total_rows > gran:
        # v7x: keep at least two grid steps so both TensorCores get work on
        # the "parallel" batch axis.
        rows = min(rows, _round_up(pl.cdiv(total_rows, 2), gran))
    return min(rows, _round_up(total_rows, gran))


# ---------------------------------------------------------------------------
# Wrapper
# ---------------------------------------------------------------------------
def emb_forward(x, w1, b1, w2, b2, w3, b3, *, block_rows=None,
                compute_dtype=None):
    """Forward pass of `Emb`.

    x: (B, N, D).  Weights are stored (in, out):
      w1 (D, D), b1 (D,), w2 (2D, H), b2 (H,), w3 (H, 1), b3 (1,).
    Returns float32 scores of shape (B, N-1, 1).

    compute_dtype: optional narrower dtype (e.g. jnp.bfloat16) for x and the
    matmul weights; accumulation stays float32.  Halves the dominant HBM
    stream on v6e/v7x.
    """
    B, N, D = x.shape
    H = w2.shape[1]
    assert w2.shape[0] == 2 * D and N >= 2
    if N % _SUBLANE:
        # TODO(synk): general N needs masked handling of the per-group row-0
        # extraction (group boundaries must align to f32 sublane tiles).
        raise NotImplementedError("N (src_data.shape[1]) must be a multiple of 8")

    if compute_dtype is not None:
        x = x.astype(compute_dtype)
        w1 = w1.astype(compute_dtype)
        w2 = w2.astype(compute_dtype)

    total_rows = B * N
    x_flat = x.reshape(total_rows, D)     # merge of leading dims: free bitcast

    cap, multi_tc = _tpu_vmem_profile()
    vmem_budget = min(cap // 2, 64 * 1024 * 1024)          # 32 MiB v7x, 64 MiB v5e/v6e
    vmem_limit = int(min(cap * 3 // 4, 96 * 1024 * 1024))  # 48 MiB v7x, 96 MiB v5e/v6e

    gran = N * _LANE // math.gcd(N, _LANE)
    if block_rows is None:
        block_rows = _choose_block_rows(total_rows, N, D, H,
                                        x_flat.dtype.itemsize,
                                        vmem_budget, multi_tc)
    R = int(block_rows)
    assert R % gran == 0, "block_rows must be a multiple of lcm(N, 128)"
    G = R // _LANE
    # Grid over-covers the row stream (no zero-padding copy of x): OOB reads
    # in the last block are unspecified and only ever feed output rows the
    # wrapper slices away; the output array itself is fully in bounds.
    nblk = pl.cdiv(total_rows, R)

    # Glue (all tiny): split W2 so the kernel avoids an explicit concat,
    # biases / W3 as rows, b3 as an SMEM scalar.
    w2p = w2[:D, :]
    w2r = w2[D:, :]
    b1_ = b1.reshape(1, D).astype(jnp.float32)
    b2_ = b2.reshape(1, H).astype(jnp.float32)
    w3_ = w3.reshape(1, H).astype(jnp.float32)
    b3_ = b3.reshape(1).astype(jnp.float32)

    const2 = lambda r, c: pl.BlockSpec((r, c), lambda b: (0, 0))

    rows_done = nblk * R
    flops = (2 * rows_done * D * D             # mlp_1
             + 2 * rows_done * D * H           # 'rest' matmul
             + 2 * (rows_done // N) * D * H    # 'present' matmul
             + 2 * rows_done * H)              # final mul + reduce
    transcendentals = rows_done * (D + H + 1)  # tanh, tanh, sigmoid
    bytes_accessed = (x_flat.dtype.itemsize * total_rows * D
                      + w1.dtype.itemsize * (D * D + 2 * D * H)
                      + 4 * (D + 2 * H + 1)
                      + 4 * nblk * G * _LANE)

    out = pl.pallas_call(
        functools.partial(_emb_kernel, N),
        out_shape=jax.ShapeDtypeStruct((nblk, G, _LANE), jnp.float32),
        grid_spec=pltpu.PrefetchScalarGridSpec(
            num_scalar_prefetch=0,
            grid=(nblk,),
            in_specs=[
                pl.BlockSpec((R, D), lambda b: (b, 0)),            # x stream
                const2(D, D),                                       # w1
                const2(1, D),                                       # b1
                const2(D, H),                                       # w2_present
                const2(D, H),                                       # w2_rest
                const2(1, H),                                       # b2
                const2(1, H),                                       # w3 row
                pl.BlockSpec(memory_space=pltpu.MemorySpace.SMEM),  # b3 scalar
            ],
            out_specs=pl.BlockSpec((1, G, _LANE), lambda b: (b, 0, 0)),
        ),
        compiler_params=pltpu.CompilerParams(
            dimension_semantics=("parallel",),
            vmem_limit_bytes=vmem_limit,
        ),
        cost_estimate=pl.CostEstimate(
            flops=int(flops),
            transcendentals=int(transcendentals),
            bytes_accessed=int(bytes_accessed),
        ),
    )(x_flat, w1, b1_, w2p, w2r, b2_, w3_, b3_)

    # Drop boundary garbage and each group's row-0 (self-concat) score; the
    # output is tiny so this post-processing is negligible.
    scores = out.reshape(nblk * G * _LANE)[:total_rows].reshape(B, N)[:, 1:]
    return scores.reshape(B, N - 1, 1)


def emb_reference(x, w1, b1, w2, b2, w3, b3):
    """Pure-JAX reference mirroring the PyTorch forward exactly."""
    new_data = jnp.tanh(x @ w1 + b1)                          # (B, N, D)
    B, N, D = x.shape
    present = jnp.broadcast_to(new_data[:, 0:1, :], (B, N - 1, D))
    new_input = jnp.concatenate([present, new_data[:, 1:, :]], axis=-1)
    h = jnp.tanh(new_input @ w2 + b2)
    return jax.nn.sigmoid(h @ w3 + b3)                        # (B, N-1, 1)


if __name__ == "__main__":
    key = jax.random.PRNGKey(0)
    kx, k1, kb1, k2, kb2, k3, kb3 = jax.random.split(key, 7)

    # Small shapes consistent with the module (relaM_dim -> D, hidden_dim -> H).
    # B=40, N=8 gives 320 flattened rows: enough to exercise a multi-step grid
    # with a ragged (partially out-of-bounds) last slab when block_rows=128.
    B, N, D, H = 40, 8, 32, 16

    x = jax.random.normal(kx, (B, N, D), dtype=jnp.float32)
    w1 = jax.random.normal(k1, (D, D), dtype=jnp.float32) / np.sqrt(D)
    b1 = jax.random.normal(kb1, (D,), dtype=jnp.float32) * 0.1
    w2 = jax.random.normal(k2, (2 * D, H), dtype=jnp.float32) / np.sqrt(2 * D)
    b2 = jax.random.normal(kb2, (H,), dtype=jnp.float32) * 0.1
    w3 = jax.random.normal(k3, (H, 1), dtype=jnp.float32) / np.sqrt(H)
    b3 = jax.random.normal(kb3, (1,), dtype=jnp.float32) * 0.1

    ref = np.asarray(emb_reference(x, w1, b1, w2, b2, w3, b3))

    # 1) Auto-sized slabs (gated on the chip's VMEM / TensorCore count).
    out = jax.block_until_ready(emb_forward(x, w1, b1, w2, b2, w3, b3))
    assert out.shape == (B, N - 1, 1)
    np.testing.assert_allclose(np.asarray(out), ref, rtol=1e-3, atol=1e-3)

    # 2) Forced small slabs: 3 grid steps with a ragged last block (no x
    #    zero-padding copy anywhere).
    out2 = jax.block_until_ready(
        emb_forward(x, w1, b1, w2, b2, w3, b3, block_rows=128))
    np.testing.assert_allclose(np.asarray(out2), ref, rtol=1e-3, atol=1e-3)

    # 3) bf16 input/weight stream (f32 accumulation): halves HBM traffic on
    #    v6e/v7x; looser tolerance for the reduced input precision.
    out3 = jax.block_until_ready(
        emb_forward(x, w1, b1, w2, b2, w3, b3, compute_dtype=jnp.bfloat16))
    np.testing.assert_allclose(np.asarray(out3), ref, rtol=5e-2, atol=5e-2)

    print("KERNEL_OK")
</pallas_src>

<mosaic_0001>
module attributes {stable_mosaic.version = 11 : i64} {
  func.func @_emb_kernel(%arg0: i32, %arg1: memref<256x32xf32, #tpu.memory_space<vmem>>, %arg2: memref<32x32xf32, #tpu.memory_space<vmem>>, %arg3: memref<1x32xf32, #tpu.memory_space<vmem>>, %arg4: memref<32x16xf32, #tpu.memory_space<vmem>>, %arg5: memref<32x16xf32, #tpu.memory_space<vmem>>, %arg6: memref<1x16xf32, #tpu.memory_space<vmem>>, %arg7: memref<1x16xf32, #tpu.memory_space<vmem>>, %arg8: memref<1xf32, #tpu.memory_space<smem>>, %arg9: memref<1x2x128xf32, #tpu.memory_space<vmem>>) attributes {dimension_semantics = [#tpu.dimension_semantics<parallel>], iteration_bounds = array<i64: 2>, scalar_prefetch = 0 : i64, scratch_operands = 0 : i64, tpu.core_type = #tpu.core_type<tc>, window_params = [{transform_indices = @transform_0, window_bounds = array<i64: 256, 32>}, {pipeline_mode = #tpu.pipeline_mode<synchronous>, transform_indices = @transform_1, window_bounds = array<i64: 32, 32>}, {pipeline_mode = #tpu.pipeline_mode<synchronous>, transform_indices = @transform_2, window_bounds = array<i64: 1, 32>}, {pipeline_mode = #tpu.pipeline_mode<synchronous>, transform_indices = @transform_3, window_bounds = array<i64: 32, 16>}, {pipeline_mode = #tpu.pipeline_mode<synchronous>, transform_indices = @transform_4, window_bounds = array<i64: 32, 16>}, {pipeline_mode = #tpu.pipeline_mode<synchronous>, transform_indices = @transform_5, window_bounds = array<i64: 1, 16>}, {pipeline_mode = #tpu.pipeline_mode<synchronous>, transform_indices = @transform_6, window_bounds = array<i64: 1, 16>}, {transform_indices = @transform_7, window_bounds = array<i64: 1>}, {transform_indices = @transform_8, window_bounds = array<i64: 1, 2, 128>}]} {
    %c0 = arith.constant 0 : index
    %c0_0 = arith.constant 0 : index
    %0 = vector.load %arg1[%c0, %c0_0] : memref<256x32xf32, #tpu.memory_space<vmem>>, vector<256x32xf32>
    %c0_1 = arith.constant 0 : index
    %c0_2 = arith.constant 0 : index
    %1 = vector.load %arg2[%c0_1, %c0_2] : memref<32x32xf32, #tpu.memory_space<vmem>>, vector<32x32xf32>
    %cst = arith.constant dense<0.000000e+00> : vector<256x32xf32>
    %2 = tpu.matmul %0, %1, %cst {dimension_numbers = #tpu.dot_dimension_numbers<[1], [0], [0], [1], [0, 0, 1, 1], [], []>} : vector<256x32xf32>, vector<32x32xf32>, vector<256x32xf32> -> vector<256x32xf32>
    %c0_3 = arith.constant 0 : index
    %c0_4 = arith.constant 0 : index
    %3 = vector.load %arg3[%c0_3, %c0_4] : memref<1x32xf32, #tpu.memory_space<vmem>>, vector<1x32xf32>
    %4 = vector.broadcast %3 : vector<1x32xf32> to vector<256x32xf32>
    %5 = arith.addf %2, %4 : vector<256x32xf32>
    %6 = math.tanh %5 : vector<256x32xf32>
    %c0_5 = arith.constant 0 : index
    %c0_6 = arith.constant 0 : index
    %7 = vector.load %arg5[%c0_5, %c0_6] : memref<32x16xf32, #tpu.memory_space<vmem>>, vector<32x16xf32>
    %cst_7 = arith.constant dense<0.000000e+00> : vector<256x16xf32>
    %8 = tpu.matmul %6, %7, %cst_7 {dimension_numbers = #tpu.dot_dimension_numbers<[1], [0], [0], [1], [0, 0, 1, 1], [], []>} : vector<256x32xf32>, vector<32x16xf32>, vector<256x16xf32> -> vector<256x16xf32>
    %9 = vector.shape_cast %6 : vector<256x32xf32> to vector<32x8x32xf32>
    %10 = vector.extract_strided_slice %9 {offsets = [0, 0, 0], sizes = [32, 1, 32], strides = [1, 1, 1]} : vector<32x8x32xf32> to vector<32x1x32xf32>
    %11 = vector.shape_cast %10 : vector<32x1x32xf32> to vector<32x32xf32>
    %c0_8 = arith.constant 0 : index
    %c0_9 = arith.constant 0 : index
    %12 = vector.load %arg4[%c0_8, %c0_9] : memref<32x16xf32, #tpu.memory_space<vmem>>, vector<32x16xf32>
    %cst_10 = arith.constant dense<0.000000e+00> : vector<32x16xf32>
    %13 = tpu.matmul %11, %12, %cst_10 {dimension_numbers = #tpu.dot_dimension_numbers<[1], [0], [0], [1], [0, 0, 1, 1], [], []>} : vector<32x32xf32>, vector<32x16xf32>, vector<32x16xf32> -> vector<32x16xf32>
    %c0_11 = arith.constant 0 : index
    %c0_12 = arith.constant 0 : index
    %14 = vector.load %arg6[%c0_11, %c0_12] : memref<1x16xf32, #tpu.memory_space<vmem>>, vector<1x16xf32>
    %15 = vector.broadcast %14 : vector<1x16xf32> to vector<32x16xf32>
    %16 = arith.addf %13, %15 : vector<32x16xf32>
    %17 = vector.shape_cast %8 : vector<256x16xf32> to vector<32x8x16xf32>
    %18 = vector.shape_cast %16 : vector<32x16xf32> to vector<32x1x16xf32>
    %19 = vector.broadcast %18 : vector<32x1x16xf32> to vector<32x8x16xf32>
    %20 = arith.addf %17, %19 : vector<32x8x16xf32>
    %21 = math.tanh %20 : vector<32x8x16xf32>
    %c0_13 = arith.constant 0 : index
    %c0_14 = arith.constant 0 : index
    %22 = vector.load %arg7[%c0_13, %c0_14] : memref<1x16xf32, #tpu.memory_space<vmem>>, vector<1x16xf32>
    %23 = vector.shape_cast %22 : vector<1x16xf32> to vector<1x1x16xf32>
    %24 = vector.broadcast %23 : vector<1x1x16xf32> to vector<32x8x16xf32>
    %25 = arith.mulf %21, %24 : vector<32x8x16xf32>
    %26 = vector.shape_cast %25 : vector<32x8x16xf32> to vector<2x128x16xf32>
    %cst_15 = arith.constant dense<0.000000e+00> : vector<2x128xf32>
    %27 = vector.multi_reduction <add>, %26, %cst_15 [2] : vector<2x128x16xf32> to vector<2x128xf32>
    %c0_16 = arith.constant 0 : index
    %28 = memref.load %arg8[%c0_16] : memref<1xf32, #tpu.memory_space<smem>>
    %29 = vector.broadcast %28 : f32 to vector<2x128xf32>
    %30 = arith.addf %27, %29 : vector<2x128xf32>
    %31 = arith.negf %30 : vector<2x128xf32>
    %32 = math.exp %31 : vector<2x128xf32>
    %cst_17 = arith.constant 1.000000e+00 : f32
    %33 = vector.broadcast %cst_17 : f32 to vector<2x128xf32>
    %34 = arith.addf %33, %32 : vector<2x128xf32>
    %35 = arith.divf %33, %34 : vector<2x128xf32>
    %c0_18 = arith.constant 0 : index
    %c0_19 = arith.constant 0 : index
    %c0_20 = arith.constant 0 : index
    %36 = vector.load %arg9[%c0_18, %c0_19, %c0_20] : memref<1x2x128xf32, #tpu.memory_space<vmem>>, vector<1x2x128xf32>
    %37 = vector.shape_cast %36 : vector<1x2x128xf32> to vector<2x128xf32>
    %38 = vector.shape_cast %35 : vector<2x128xf32> to vector<1x2x128xf32>
    tpu.vector_store %arg9[%c0_18, %c0_19, %c0_20], %38 {strides = array<i32>} : memref<1x2x128xf32, #tpu.memory_space<vmem>>, vector<1x2x128xf32>,
    return
  }
  func.func @transform_0(%arg0: i32) -> (i32, i32) {
    %c0_i32 = arith.constant 0 : i32
    %c0_i32_0 = arith.constant 0 : i32
    return %arg0, %c0_i32 : i32, i32
  }
  func.func @transform_1(%arg0: i32) -> (i32, i32) {
    %c0_i32 = arith.constant 0 : i32
    %c0_i32_0 = arith.constant 0 : i32
    %c0_i32_1 = arith.constant 0 : i32
    return %c0_i32, %c0_i32_0 : i32, i32
  }
  func.func @transform_2(%arg0: i32) -> (i32, i32) {
    %c0_i32 = arith.constant 0 : i32
    %c0_i32_0 = arith.constant 0 : i32
    %c0_i32_1 = arith.constant 0 : i32
    return %c0_i32, %c0_i32_0 : i32, i32
  }
  func.func @transform_3(%arg0: i32) -> (i32, i32) {
    %c0_i32 = arith.constant 0 : i32
    %c0_i32_0 = arith.constant 0 : i32
    %c0_i32_1 = arith.constant 0 : i32
    return %c0_i32, %c0_i32_0 : i32, i32
  }
  func.func @transform_4(%arg0: i32) -> (i32, i32) {
    %c0_i32 = arith.constant 0 : i32
    %c0_i32_0 = arith.constant 0 : i32
    %c0_i32_1 = arith.constant 0 : i32
    return %c0_i32, %c0_i32_0 : i32, i32
  }
  func.func @transform_5(%arg0: i32) -> (i32, i32) {
    %c0_i32 = arith.constant 0 : i32
    %c0_i32_0 = arith.constant 0 : i32
    %c0_i32_1 = arith.constant 0 : i32
    return %c0_i32, %c0_i32_0 : i32, i32
  }
  func.func @transform_6(%arg0: i32) -> (i32, i32) {
    %c0_i32 = arith.constant 0 : i32
    %c0_i32_0 = arith.constant 0 : i32
    %c0_i32_1 = arith.constant 0 : i32
    return %c0_i32, %c0_i32_0 : i32, i32
  }
  func.func @transform_7(%arg0: i32) -> i32 {
    %c0_i32 = arith.constant 0 : i32
    %c0_i32_0 = arith.constant 0 : i32
    return %c0_i32 : i32
  }
  func.func @transform_8(%arg0: i32) -> (i32, i32, i32) {
    %c0_i32 = arith.constant 0 : i32
    %c0_i32_0 = arith.constant 0 : i32
    %c0_i32_1 = arith.constant 0 : i32
    return %arg0, %c0_i32, %c0_i32_0 : i32, i32, i32
  }
}

</mosaic_0001>

<bundles_post_ra>
// kernel: tpu_custom_call.1
= control target key start
LH: loop header
LB: loop body
LE: loop exit
PB: predicated region body
PF: predicated region fallthrough
CT: control target
= control target key end

     0   :  { %s3821_s0 = inlined_call_operand.vmem [shape: f32[320,32], index: 0, kind: input, shape index: {}]   ;;  %s3822_s1 = inlined_call_operand.vmem [shape: f32[32,32], index: 1, kind: input, shape index: {}]   ;;  %s3823_s2 = inlined_call_operand.vmem [shape: f32[1,32], index: 2, kind: input, shape index: {}]   ;;  %s3824_s3 = inlined_call_operand.vmem [shape: f32[32,16], index: 3, kind: input, shape index: {}]   ;;  %s3825_s4 = inlined_call_operand.vmem [shape: f32[32,16], index: 4, kind: input, shape index: {}]   ;;  %s3826_s5 = inlined_call_operand.vmem [shape: f32[1,16], index: 5, kind: input, shape index: {}]   ;;  %s3827_s6 = inlined_call_operand.vmem [shape: f32[1,16], index: 6, kind: input, shape index: {}]   ;;  %s3828_s7 = inlined_call_operand.<no memory space> [shape: f32[1], index: 7, kind: input, shape index: {}]   ;;  %s3829_s8 = inlined_call_operand.hbm [shape: f32[2,2,128], index: 8, kind: output, shape index: {}]  }
   0x1   :  { %13 = sst [smem:[#allocation2]] %s3828_s7 }
   0x2   :  { %14 = vsyncpa [#allocation4], 0 }
   0x3   :  { %16 = vsyncpa [#allocation4 + $0x1], 0  ;;  %s3058_s29 = smov 0   ;;  %s3060_s30 = smov 0  }
   0x4   :  { %s3062_s9 = smov 0   ;;  %s3064_s10 = smov 0  }
   0x5 LB: > { %s2299_s7 = sadd.s32 4294967295, %s3006_s10   ;;  %s2300_s11 = sadd.s32 4294967294, %s3006_s10   ;;  %s3006_s10 = sphi %s3064_s10, %s3835_s10   ;;  %s3002_s9 = sphi %s3062_s9, %s3834_s9   ;;  %s2998_s30 = sphi %s3060_s30, %s3833_s30   ;;  %s2994_s29 = sphi %s3058_s29, %s3832_s29  }
   0x6   : > { %s3081_s12 = sadd.s32 1, %s3006_s10   ;;  %s202_s13 = sadd.s32 1, %s3002_s9 }
   0x7   : > { %s199_s14 = ssub.s32 %s3006_s10, %s3081_s12  ;;  %p212_p0 = scmp.ne.s32.totalorder %s3002_s9, %s2998_s30 }
   0x8   : > { %p200_p1 = scmp.eq.s32.totalorder %s199_s14, 0  ;;  %p213_p2 = scmp.eq.s32.totalorder %s2299_s7, 1 }
   0x9   : > { %p218_p3 = scmp.ne.s32.totalorder %s2998_s30, %s2994_s29  ;;  %p219_p4 = scmp.eq.s32.totalorder %s2300_s11, 1 }
   0xa   : > { %s3091_s15 = scalar_select %p200_p1, %s3002_s9, %s202_s13  }
   0xb   : > { %p3093_p5 = por %p213_p2, %p212_p0  ;;  %p3097_p6 = por %p219_p4, %p218_p3 }
   0xc   : > { %p2303_p7 = scmp.ge.s32.totalorder %s3006_s10, 1  ;;  %p275_p8 = scmp.lt.s32.totalorder %s3006_s10, 3 }
   0xe   : > { %p276_p9 = pnand %p2303_p7, %p275_p8 }
   0xf   : > { %v359_v0 = vld [vmem:[%s3822_s1] sm:$0xff] (!%p276_p9)  ;;  %v360_v1 = vld [vmem:[%s3822_s1 + $0x8] sm:$0xff] (!%p276_p9)  ;;  %v361_v2 = vld [vmem:[%s3822_s1 + $0x10] sm:$0xff] (!%p276_p9)  ;;  %s3112_s24 = sshll.u32 (!%p276_p9), %s2299_s7, 5  ;;  %vm370_vm0 = vcmask (!%p276_p9), 261120   ;;  %vm1061_vm1 = vcmask (!%p276_p9), 1041409  }
  0x10   : > { %279 = sbr.rel (%p276_p9) target bundleno = 809 (0x329), region = 52  ;;  %v2620_v3 = vpack.c.bf16 (!%p276_p9), %v360_v1, %v359_v0  ;;  %v362_v4 = vld [vmem:[%s3822_s1 + $0x18] sm:$0xff] (!%p276_p9)  ;;  %p318_p10 = scmp.lt.s32.totalorder (!%p276_p9), %s3112_s24, 39  ;;  %v724_v38 = vld [vmem:[%s3825_s4] sm:$0xff] (!%p276_p9)  ;;  %v725_v39 = vld [vmem:[%s3825_s4 + $0x8] sm:$0xff] (!%p276_p9)  ;;  %vm1064_vm2 = vcmask (!%p276_p9), 1042434  }
  0x11   : > { %v2624_v5 = vpack.c.bf16 (!%p276_p9), %v362_v4, %v361_v2  ;;  %v2628_v40 = vpack.c.bf16 (!%p276_p9), %v725_v39, %v724_v38  ;;  %v726_v41 = vld [vmem:[%s3825_s4 + $0x10] sm:$0xff] (!%p276_p9)  ;;  %v727_v42 = vld [vmem:[%s3825_s4 + $0x18] sm:$0xff] (!%p276_p9)  ;;  %v1049_v44 = vld [vmem:[%s3824_s3] sm:$0xff] (!%p276_p9)  ;;  %vm1067_vm3 = vcmask (!%p276_p9), 1043459   ;;  %vm1070_vm4 = vcmask (!%p276_p9), 1044484   ;;  %s1776_s26 = sld [smem:[#allocation2]] (!%p276_p9)  ;;  %s3776_s18 = scalar_lea.hbm (!%p276_p9), %s3829_s8, %s3112_s24 }
  0x12   : > { %2621 = vmatprep.subr.bf16.mxu0 (!%p276_p9), %v2620_v3  ;;  %v2632_v43 = vpack.c.bf16 (!%p276_p9), %v727_v42, %v726_v41  ;;  %v1050_v45 = vld [vmem:[%s3824_s3 + $0x8] sm:$0xff] (!%p276_p9)  ;;  %v1051_v47 = vld [vmem:[%s3824_s3 + $0x10] sm:$0xff] (!%p276_p9)  ;;  %v1052_v48 = vld [vmem:[%s3824_s3 + $0x18] sm:$0xff] (!%p276_p9)  ;;  %vm1073_vm5 = vcmask (!%p276_p9), 1045509   ;;  %vm1076_vm6 = vcmask (!%p276_p9), 1046534   ;;  %vm1079_vm7 = vcmask (!%p276_p9), 1047559  }
  0x13   : > { %2623 = vmatpush3.bf16.msra.mxu0 (!%p276_p9), %v2620_v3  ;;  %2629 = vmatprep.subr.bf16.mxu1 (!%p276_p9), %v2628_v40  ;;  %v2636_v46 = vpack.c.bf16 (!%p276_p9), %v1050_v45, %v1049_v44  ;;  %v2640_v49 = vpack.c.bf16 (!%p276_p9), %v1052_v48, %v1051_v47  ;;  %v3215_v50 = vld [vmem:[%s3823_s2] ss:$0 sm:$0xff] (!%p276_p9)  ;;  %vm1679_vm8 = vcmask (!%p276_p9), 130048   ;;  %vm2045_vm9 = vcmask (!%p276_p9), 130112   ;;  %s3009_s21 = smov (!%p276_p9), [#allocation3]  }
  0x14   : > { %2625 = vmatprep.subr.bf16.mxu0 (!%p276_p9), %v2624_v5  ;;  %2631 = vmatpush3.bf16.msra.mxu1 (!%p276_p9), %v2628_v40  ;;  %vm2052_vm10 = vcmask (!%p276_p9), 195712   ;;  %vm2059_vm11 = vcmask (!%p276_p9), 261312   ;;  %vm2066_vm12 = vcmask (!%p276_p9), 326912   ;;  %vm2073_vm13 = vcmask (!%p276_p9), 392512   ;;  %s2948_s22 = sshll.u32 (!%p276_p9), %s3009_s21, 4  ;;  %s2949_s22 = int_to_ptr.vmem [resolvable:$false] %s2948_s22 }
  0x15   : > { %2633 = vmatprep.subr.bf16.mxu1 (!%p276_p9), %v2632_v43  ;;  %vm2080_vm14 = vcmask (!%p276_p9), 458112   ;;  %vm2087_vm15 = vcmask (!%p276_p9), 523712  }
  0x17   : > { %s319_s27 = scalar_select %p318_p10, %s3112_s24, 39  ;;  %2627 = vmatpush3.bf16.msra.mxu0 %v2624_v5 }
  0x18   : > { %2635 = vmatpush3.bf16.msra.mxu1 %v2632_v43  ;;  %2637 = vmatprep.subr.bf16.mxu0 %v2636_v46  ;;  %s2950_s24 = scalar_lea.vmem %s2949_s22, 64 }
  0x19   : > { %s2306_s28 = sshll.u32 %s319_s27, 3  ;;  %2644 = vmatprep.subr.bf16.mxu1 %v2636_v46  ;;  %s310_s27 = sand.u32 1, %s2998_s30  }
  0x1a   : > { %s3122_s7 = scalar_lea.vmem %s3821_s0, %s2306_s28  ;;  %s3753_s28 = sshll.u32 %s310_s27, 1 }
  0x1b   : > { %v327_v6 = vld [vmem:[%s3122_s7] sm:$0xff]  ;;  %v328_v7 = vld [vmem:[%s3122_s7 + $0x8] sm:$0xff]  ;;  %v329_v8 = vld [vmem:[%s3122_s7 + $0x10] sm:$0xff]  ;;  %s312_s11 = scalar_lea.vmem [#allocation3], %s3753_s28  ;;  %s2228_s19 = scalar_lea.sflag [#allocation4], %s310_s27 }
  0x1c   : > { %2502 = vmatprep.mubr.msk.f32.mxu0 %vm370_vm0, %v327_v6  ;;  %v330_v9 = vld [vmem:[%s3122_s7 + $0x18] sm:$0xff]  ;;  %v331_v10 = vld [vmem:[%s3122_s7 + $0x20] sm:$0xff]  ;;  %v332_v11 = vld [vmem:[%s3122_s7 + $0x28] sm:$0xff]  ;;  %s2241_s13 = sshll.u32 %s312_s11, 4  ;;  %s3778_s13 = int_to_ptr.vmem [resolvable:$true] %s2241_s13 }
  0x1d   : > { %2503 = vmatmul.mubr.msk.f32.vlgmr.msra.gmra.mrb[0].mxu0 %vm370_vm0, %v328_v7  ;;  %v333_v12 = vld [vmem:[%s3122_s7 + $0x30] sm:$0xff]  ;;  %v334_v13 = vld [vmem:[%s3122_s7 + $0x38] sm:$0xff]  ;;  %v335_v14 = vld [vmem:[%s3122_s7 + $0x40] sm:$0xff]  ;;  %s2944_s20 = scalar_lea.vmem %s3778_s13, 32  ;;  %p2951_p0 = scmp.lt.s32.totalorder %s3778_s13, %s2949_s22 }
  0x1e   : > { %2505 = vmatprep.mubr.msk.f32.mxu0 %vm370_vm0, %v329_v8  ;;  %v336_v15 = vld [vmem:[%s3122_s7 + $0x48] sm:$0xff]  ;;  %v337_v16 = vld [vmem:[%s3122_s7 + $0x50] sm:$0xff]  ;;  %v338_v17 = vld [vmem:[%s3122_s7 + $0x58] sm:$0xff]  ;;  %2639 = vmatpush3.bf16.msra.mxu0 %v2636_v46  ;;  %p2945_p11 = scmp.ne.s32.totalorder %s3778_s13, %s2944_s20  ;;  %p2952_p1 = scmp.lt.s32.totalorder %s2950_s24, %s2944_s20 }
  0x1f   : > { %v339_v18 = vld [vmem:[%s3122_s7 + $0x60] sm:$0xff]  ;;  %v340_v19 = vld [vmem:[%s3122_s7 + $0x68] sm:$0xff]  ;;  %v341_v20 = vld [vmem:[%s3122_s7 + $0x70] sm:$0xff]  ;;  %2641 = vmatprep.subr.bf16.mxu0 %v2640_v49 }
  0x20   : > { %v342_v21 = vld [vmem:[%s3122_s7 + $0x78] sm:$0xff]  ;;  %v343_v22 = vld [vmem:[%s3122_s7 + $0x80] sm:$0xff]  ;;  %v344_v23 = vld [vmem:[%s3122_s7 + $0x88] sm:$0xff]  ;;  %p2946_p12 = pnand %p2945_p11, %p3093_p5  ;;  %p2953_p2 = por %p2952_p1, %p2951_p0 }
  0x21   : > { %2506 = vmatmul.mubr.msk.f32.gmra.mrb[2].mxu0 %vm370_vm0, %v330_v9  ;;  %v345_v24 = vld [vmem:[%s3122_s7 + $0x90] sm:$0xff]  ;;  %v346_v25 = vld [vmem:[%s3122_s7 + $0x98] sm:$0xff]  ;;  %v347_v26 = vld [vmem:[%s3122_s7 + $0xa0] sm:$0xff] }
  0x22   : > { %2508 = vmatprep.mubr.msk.f32.mxu0 %vm370_vm0, %v331_v10  ;;  %v348_v27 = vld [vmem:[%s3122_s7 + $0xa8] sm:$0xff]  ;;  %v349_v28 = vld [vmem:[%s3122_s7 + $0xb0] sm:$0xff]  ;;  %v350_v29 = vld [vmem:[%s3122_s7 + $0xb8] sm:$0xff]  ;;  %2643 = vmatpush3.bf16.msra.mxu0 %v2640_v49  ;;  %p2947_p13 = pneg %p2946_p12 }
  0x23   : > { %v351_v30 = vld [vmem:[%s3122_s7 + $0xc0] sm:$0xff]  ;;  %v352_v31 = vld [vmem:[%s3122_s7 + $0xc8] sm:$0xff]  ;;  %v353_v32 = vld [vmem:[%s3122_s7 + $0xd0] sm:$0xff] }
  0x24   : > { %v354_v33 = vld [vmem:[%s3122_s7 + $0xd8] sm:$0xff]  ;;  %v355_v34 = vld [vmem:[%s3122_s7 + $0xe0] sm:$0xff]  ;;  %v356_v35 = vld [vmem:[%s3122_s7 + $0xe8] sm:$0xff]  ;;  %p2954_p3 = pnand %p2953_p2, %p2947_p13 }
  0x25   : > { %2509 = vmatmul.mubr.msk.f32.gmra.mrb[4].mxu0 %vm370_vm0, %v332_v11  ;;  %v357_v36 = vld [vmem:[%s3122_s7 + $0xf0] sm:$0xff]  ;;  %v358_v37 = vld [vmem:[%s3122_s7 + $0xf8] sm:$0xff] }
  0x26   : > { %2511 = vmatprep.mubr.msk.f32.mxu0 %vm370_vm0, %v333_v12 }
  0x29   : > { %2512 = vmatmul.mubr.msk.f32.gmra.mrb[6].mxu0 %vm370_vm0, %v334_v13 }
  0x2a   : > { %2514 = vmatprep.mubr.msk.f32.mxu0 %vm370_vm0, %v335_v14 }
  0x2d   : > { %2515 = vmatmul.mubr.msk.f32.gmra.mrb[8].mxu0 %vm370_vm0, %v336_v15 }
  0x2e   : > { %2517 = vmatprep.mubr.msk.f32.mxu0 %vm370_vm0, %v337_v16 }
  0x31   : > { %2518 = vmatmul.mubr.msk.f32.gmra.mrb[10].mxu0 %vm370_vm0, %v338_v17 }
  0x32   : > { %2520 = vmatprep.mubr.msk.f32.mxu0 %vm370_vm0, %v339_v18 }
  0x35   : > { %2521 = vmatmul.mubr.msk.f32.gmra.mrb[12].mxu0 %vm370_vm0, %v340_v19 }
  0x36   : > { %2523 = vmatprep.mubr.msk.f32.mxu0 %vm370_vm0, %v341_v20 }
  0x39   : > { %2524 = vmatmul.mubr.msk.f32.gmra.mrb[14].mxu0 %vm370_vm0, %v342_v21 }
  0x3a   : > { %2526 = vmatprep.mubr.msk.f32.mxu0 %vm370_vm0, %v343_v22 }
  0x3d   : > { %2527 = vmatmul.mubr.msk.f32.gmra.mrb[16].mxu0 %vm370_vm0, %v344_v23 }
  0x3e   : > { %2529 = vmatprep.mubr.msk.f32.mxu0 %vm370_vm0, %v345_v24 }
  0x41   : > { %2530 = vmatmul.mubr.msk.f32.gmra.mrb[18].mxu0 %vm370_vm0, %v346_v25 }
  0x42   : > { %2532 = vmatprep.mubr.msk.f32.mxu0 %vm370_vm0, %v347_v26 }
  0x45   : > { %2533 = vmatmul.mubr.msk.f32.gmra.mrb[20].mxu0 %vm370_vm0, %v348_v27 }
  0x46   : > { %2535 = vmatprep.mubr.msk.f32.mxu0 %vm370_vm0, %v349_v28 }
  0x49   : > { %2536 = vmatmul.mubr.msk.f32.gmra.mrb[22].mxu0 %vm370_vm0, %v350_v29 }
  0x4a   : > { %2538 = vmatprep.mubr.msk.f32.mxu0 %vm370_vm0, %v351_v30 }
  0x4d   : > { %2539 = vmatmul.mubr.msk.f32.gmra.mrb[24].mxu0 %vm370_vm0, %v352_v31 }
  0x4e   : > { %2541 = vmatprep.mubr.msk.f32.mxu0 %vm370_vm0, %v353_v32 }
  0x51   : > { %2542 = vmatmul.mubr.msk.f32.gmra.mrb[26].mxu0 %vm370_vm0, %v354_v33 }
  0x52   : > { %2544 = vmatprep.mubr.msk.f32.mxu0 %vm370_vm0, %v355_v34 }
  0x55   : > { %2545 = vmatmul.mubr.msk.f32.gmra.mrb[28].mxu0 %vm370_vm0, %v356_v35 }
  0x56   : > { %2547 = vmatprep.mubr.msk.f32.mxu0 %vm370_vm0, %v357_v36 }
  0x59   : > { %2548 = vmatmul.mubr.msk.f32.gmra.mrb[30].mxu0 %vm370_vm0, %v358_v37 }
  0xf0   : > { %v2504_v51 = vpop.f32.mrb[0].mxu0 }
  0xf1   : > { %v539_v52 = vadd.f32 %v2504_v51, %v3215_v50  ;;  %v533_v53 = vpop.f32.mrb[1].mxu0 }
  0xf2   : > { %v534_v54 = vadd.f32 %v3215_v50, %v533_v53 }
  0xf3   : > { %2688 = vtanh.f32 %v539_v52 }
  0xf4   : > { %2690 = vtanh.f32 %v534_v54  ;;  %v2507_v55 = vpop.f32.mrb[2].mxu0 }
  0xf5   : > { %v549_v56 = vadd.f32 %v2507_v55, %v3215_v50  ;;  %v543_v57 = vpop.f32.mrb[3].mxu0 }
  0xf6   : > { %v544_v58 = vadd.f32 %v3215_v50, %v543_v57 }
  0xf7   : > { %2692 = vtanh.f32 %v549_v56 }
  0xf8   : > { %2694 = vtanh.f32 %v544_v58  ;;  %v2510_v59 = vpop.f32.mrb[4].mxu0 }
  0xf9   : > { %v559_v60 = vadd.f32 %v2510_v59, %v3215_v50  ;;  %v553_v61 = vpop.f32.mrb[5].mxu0 }
  0xfa   : > { %v554_v62 = vadd.f32 %v3215_v50, %v553_v61 }
  0xfb   : > { %2696 = vtanh.f32 %v559_v60 }
  0xfc   : > { %2698 = vtanh.f32 %v554_v62  ;;  %v2513_v63 = vpop.f32.mrb[6].mxu0 }
  0xfd   : > { %v2689_v0 = vpop.eup %2688  ;;  %v569_v1 = vadd.f32 %v2513_v63, %v3215_v50  ;;  %v563_v2 = vpop.f32.mrb[7].mxu0 }
  0xfe   : > { %v2691_v3 = vpop.eup %2690  ;;  %v1060_v4 = vrot.slane %v2689_v0, 7  ;;  %v564_v5 = vadd.f32 %v3215_v50, %v563_v2 }
  0xff   : > { %2700 = vtanh.f32 %v569_v1  ;;  %2558 = vmatprep.mubr.msk.f32.mxu1 %vm370_vm0, %v2691_v3 }
 0x100   : > { %2702 = vtanh.f32 %v564_v5  ;;  %v2516_v6 = vpop.f32.mrb[8].mxu0  ;;  %2559 = vmatmul.mubr.msk.f32.vlgmr.msra.gmra.mrb[0].mxu1 %vm370_vm0, %v2689_v0  ;;  %v1062_v7 = vsel %vm1061_vm1, %v1060_v4, %v2691_v3 }
 0x101   : > { %v2693_v8 = vpop.eup %2692  ;;  %v579_v9 = vadd.f32 %v2516_v6, %v3215_v50  ;;  %2646 = vmatpush3.bf16.msra.mxu1 %v2636_v46  ;;  %v573_v10 = vpop.f32.mrb[9].mxu0 }
 0x102   : > { %v2695_v11 = vpop.eup %2694  ;;  %v574_v12 = vadd.f32 %v3215_v50, %v573_v10  ;;  %2645 = vmatprep.subr.bf16.mxu1 %v2640_v49  ;;  %v1066_v14 = vrot.slane %v2693_v8, 5 }
 0x103   : > { %v1063_v13 = vrot.slane %v2695_v11, 6  ;;  %2704 = vtanh.f32 %v579_v9  ;;  %2561 = vmatprep.mubr.msk.f32.mxu1 %vm370_vm0, %v2695_v11 }
 0x104   : > { %2706 = vtanh.f32 %v574_v12  ;;  %v2519_v15 = vpop.f32.mrb[10].mxu0  ;;  %2562 = vmatmul.mubr.msk.f32.gmra.mrb[2].mxu1 %vm370_vm0, %v2693_v8 }
 0x105   : > { %v2697_v16 = vpop.eup %2696  ;;  %v589_v17 = vadd.f32 %v2519_v15, %v3215_v50  ;;  %v583_v18 = vpop.f32.mrb[11].mxu0  ;;  %v1065_v19 = vsel %vm1064_vm2, %v1063_v13, %v1062_v7  ;;  %2647 = vmatpush3.bf16.msra.mxu1 %v2640_v49 }
 0x106   : > { %v2699_v20 = vpop.eup %2698  ;;  %v584_v21 = vadd.f32 %v3215_v50, %v583_v18  ;;  %v1068_v22 = vsel %vm1067_vm3, %v1066_v14, %v1065_v19  ;;  %v1072_v24 = vrot.slane %v2697_v16, 3 }
 0x107   : > { %v1069_v23 = vrot.slane %v2699_v20, 4  ;;  %2708 = vtanh.f32 %v589_v17  ;;  %2564 = vmatprep.mubr.msk.f32.mxu1 %vm370_vm0, %v2699_v20 }
 0x108   : > { %2710 = vtanh.f32 %v584_v21  ;;  %v2522_v25 = vpop.f32.mrb[12].mxu0  ;;  %2565 = vmatmul.mubr.msk.f32.gmra.mrb[4].mxu1 %vm370_vm0, %v2697_v16 }
 0x109   : > { %v2701_v26 = vpop.eup %2700  ;;  %v599_v27 = vadd.f32 %v2522_v25, %v3215_v50  ;;  %v593_v28 = vpop.f32.mrb[13].mxu0  ;;  %v1071_v29 = vsel %vm1070_vm4, %v1069_v23, %v1068_v22 }
 0x10a   : > { %v2703_v30 = vpop.eup %2702  ;;  %v594_v31 = vadd.f32 %v3215_v50, %v593_v28  ;;  %v1074_v32 = vsel %vm1073_vm5, %v1072_v24, %v1071_v29  ;;  %v1078_v35 = vrot.slane %v2701_v26, 1 }
 0x10b   : > { %2712 = vtanh.f32 %v599_v27  ;;  %2567 = vmatprep.mubr.msk.f32.mxu1 %vm370_vm0, %v2703_v30  ;;  %v1075_v33 = vrot.slane %v2703_v30, 2 }
 0x10c   : > { %2714 = vtanh.f32 %v594_v31  ;;  %v2525_v34 = vpop.f32.mrb[14].mxu0  ;;  %2568 = vmatmul.mubr.msk.f32.gmra.mrb[6].mxu1 %vm370_vm0, %v2701_v26 }
 0x10d   : > { %v2705_v36 = vpop.eup %2704  ;;  %v609_v37 = vadd.f32 %v2525_v34, %v3215_v50  ;;  %v603_v38 = vpop.f32.mrb[15].mxu0  ;;  %v1077_v39 = vsel %vm1076_vm6, %v1075_v33, %v1074_v32 }
 0x10e   : > { %v2707_v40 = vpop.eup %2706  ;;  %v1081_v41 = vrot.slane %v2705_v36, 7  ;;  %v604_v42 = vadd.f32 %v3215_v50, %v603_v38  ;;  %v1080_v43 = vsel %vm1079_vm7, %v1078_v35, %v1077_v39 }
 0x10f   : > { %2716 = vtanh.f32 %v609_v37  ;;  %2570 = vmatprep.mubr.msk.f32.mxu1 %vm370_vm0, %v2707_v40  ;;  %2614 = vmatprep.mubr.msk.f32.mxu0 %vm370_vm0, %v1080_v43 }
 0x110   : > { %v1082_v44 = vsel %vm1061_vm1, %v1081_v41, %v2707_v40  ;;  %2718 = vtanh.f32 %v604_v42  ;;  %v2528_v45 = vpop.f32.mrb[16].mxu0  ;;  %2571 = vmatmul.mubr.msk.f32.gmra.mrb[8].mxu1 %vm370_vm0, %v2705_v36 }
 0x111   : > { %v2709_v46 = vpop.eup %2708  ;;  %v619_v47 = vadd.f32 %v2528_v45, %v3215_v50  ;;  %v613_v48 = vpop.f32.mrb[17].mxu0 }
 0x112   : > { %v2711_v49 = vpop.eup %2710  ;;  %v614_v51 = vadd.f32 %v3215_v50, %v613_v48  ;;  %v1085_v53 = vrot.slane %v2709_v46, 5 }
 0x113   : > { %v1083_v52 = vrot.slane %v2711_v49, 6  ;;  %2720 = vtanh.f32 %v619_v47  ;;  %2573 = vmatprep.mubr.msk.f32.mxu1 %vm370_vm0, %v2711_v49 }
 0x114   : > { %2722 = vtanh.f32 %v614_v51  ;;  %v2531_v54 = vpop.f32.mrb[18].mxu0  ;;  %2574 = vmatmul.mubr.msk.f32.gmra.mrb[10].mxu1 %vm370_vm0, %v2709_v46 }
 0x115   : > { %v2713_v55 = vpop.eup %2712  ;;  %v1084_v56 = vsel %vm1064_vm2, %v1083_v52, %v1082_v44  ;;  %v629_v57 = vadd.f32 %v2531_v54, %v3215_v50  ;;  %v623_v58 = vpop.f32.mrb[19].mxu0 }
 0x116   : > { %v2715_v59 = vpop.eup %2714  ;;  %v624_v60 = vadd.f32 %v3215_v50, %v623_v58  ;;  %v1086_v61 = vsel %vm1067_vm3, %v1085_v53, %v1084_v56  ;;  %v1089_v63 = vrot.slane %v2713_v55, 3 }
 0x117   : > { %v1087_v62 = vrot.slane %v2715_v59, 4  ;;  %2724 = vtanh.f32 %v629_v57  ;;  %2576 = vmatprep.mubr.msk.f32.mxu1 %vm370_vm0, %v2715_v59 }
 0x118   : > { %2726 = vtanh.f32 %v624_v60  ;;  %v2534_v0 = vpop.f32.mrb[20].mxu0  ;;  %2577 = vmatmul.mubr.msk.f32.gmra.mrb[12].mxu1 %vm370_vm0, %v2713_v55 }
 0x119   : > { %v2717_v1 = vpop.eup %2716  ;;  %v639_v2 = vadd.f32 %v2534_v0, %v3215_v50  ;;  %v633_v3 = vpop.f32.mrb[21].mxu0  ;;  %v1088_v4 = vsel %vm1070_vm4, %v1087_v62, %v1086_v61 }
 0x11a   : > { %v2719_v5 = vpop.eup %2718  ;;  %v634_v6 = vadd.f32 %v3215_v50, %v633_v3  ;;  %v1090_v7 = vsel %vm1073_vm5, %v1089_v63, %v1088_v4  ;;  %v1093_v9 = vrot.slane %v2717_v1, 1 }
 0x11b   : > { %v1091_v8 = vrot.slane %v2719_v5, 2  ;;  %2728 = vtanh.f32 %v639_v2  ;;  %2579 = vmatprep.mubr.msk.f32.mxu1 %vm370_vm0, %v2719_v5 }
 0x11c   : > { %2730 = vtanh.f32 %v634_v6  ;;  %v2537_v10 = vpop.f32.mrb[22].mxu0  ;;  %2580 = vmatmul.mubr.msk.f32.gmra.mrb[14].mxu1 %vm370_vm0, %v2717_v1 }
 0x11d   : > { %v2721_v11 = vpop.eup %2720  ;;  %v649_v12 = vadd.f32 %v2537_v10, %v3215_v50  ;;  %v643_v13 = vpop.f32.mrb[23].mxu0  ;;  %v1092_v14 = vsel %vm1076_vm6, %v1091_v8, %v1090_v7 }
 0x11e   : > { %v2723_v15 = vpop.eup %2722  ;;  %v1095_v16 = vrot.slane %v2721_v11, 7  ;;  %v644_v17 = vadd.f32 %v3215_v50, %v643_v13  ;;  %v1094_v18 = vsel %vm1079_vm7, %v1093_v9, %v1092_v14 }
 0x11f   : > { %2732 = vtanh.f32 %v649_v12  ;;  %2582 = vmatprep.mubr.msk.f32.mxu1 %vm370_vm0, %v2723_v15  ;;  %2615 = vmatmul.mubr.msk.f32.vlgmr.msra.gmra.mrb[32].mxu0 %vm370_vm0, %v1094_v18 }
 0x120   : > { %2734 = vtanh.f32 %v644_v17  ;;  %v2540_v19 = vpop.f32.mrb[24].mxu0  ;;  %2583 = vmatmul.mubr.msk.f32.gmra.mrb[16].mxu1 %vm370_vm0, %v2721_v11  ;;  %v1096_v20 = vsel %vm1061_vm1, %v1095_v16, %v2723_v15 }
 0x121   : > { %v2725_v21 = vpop.eup %2724  ;;  %v659_v22 = vadd.f32 %v2540_v19, %v3215_v50  ;;  %v653_v23 = vpop.f32.mrb[25].mxu0 }
 0x122   : > { %v2727_v24 = vpop.eup %2726  ;;  %v654_v25 = vadd.f32 %v3215_v50, %v653_v23  ;;  %v1099_v27 = vrot.slane %v2725_v21, 5 }
 0x123   : > { %v1097_v26 = vrot.slane %v2727_v24, 6  ;;  %2736 = vtanh.f32 %v659_v22  ;;  %2585 = vmatprep.mubr.msk.f32.mxu1 %vm370_vm0, %v2727_v24  ;;  %v3008_v24 = vmov 1966171168  }
 0x124   : > { %2738 = vtanh.f32 %v654_v25  ;;  %v2543_v28 = vpop.f32.mrb[26].mxu0  ;;  %2586 = vmatmul.mubr.msk.f32.gmra.mrb[18].mxu1 %vm370_vm0, %v2725_v21  ;;  %v1222_v25 = vunpack.c.l.s4 %v3008_v24 }
 0x125   : > { %v2729_v29 = vpop.eup %2728  ;;  %v669_v30 = vadd.f32 %v2543_v28, %v3215_v50  ;;  %v663_v31 = vpop.f32.mrb[27].mxu0  ;;  %v1098_v32 = vsel %vm1064_vm2, %v1097_v26, %v1096_v20  ;;  %v1224_v26 = vlaneseq }
 0x126   : > { %v2731_v33 = vpop.eup %2730  ;;  %v664_v34 = vadd.f32 %v3215_v50, %v663_v31  ;;  %v1100_v35 = vsel %vm1067_vm3, %v1099_v27, %v1098_v32  ;;  %v1103_v37 = vrot.slane %v2729_v29, 3 }
 0x127   : > { %v1101_v36 = vrot.slane %v2731_v33, 4  ;;  %2740 = vtanh.f32 %v669_v30  ;;  %2588 = vmatprep.mubr.msk.f32.mxu1 %vm370_vm0, %v2731_v33  ;;  %v3330_v30 = vshrl.u32 %v1224_v26, 7  ;;  %v3337_v33 = vld [vmem:[%s3826_s5] ss:$0 sm:$0xff] }
 0x128   : > { %2742 = vtanh.f32 %v664_v34  ;;  %v2546_v38 = vpop.f32.mrb[28].mxu0  ;;  %2589 = vmatmul.mubr.msk.f32.gmra.mrb[20].mxu1 %vm370_vm0, %v2729_v29  ;;  %v1223_v29 = vunpack.c.0.s8 %v1222_v25 }
 0x129   : > { %v2733_v39 = vpop.eup %2732  ;;  %v679_v40 = vadd.f32 %v2546_v38, %v3215_v50  ;;  %v673_v41 = vpop.f32.mrb[29].mxu0  ;;  %v1102_v42 = vsel %vm1070_vm4, %v1101_v36, %v1100_v35 }
 0x12a   : > { %v2735_v43 = vpop.eup %2734  ;;  %v674_v44 = vadd.f32 %v3215_v50, %v673_v41  ;;  %v1104_v45 = vsel %vm1073_vm5, %v1103_v37, %v1102_v42  ;;  %v1107_v48 = vrot.slane %v2733_v39, 1  ;;  %v3340_v34 = vsub.s32 %v1223_v29, %v3330_v30 }
 0x12b   : > { %2744 = vtanh.f32 %v679_v40  ;;  %2591 = vmatprep.mubr.msk.f32.mxu1 %vm370_vm0, %v2735_v43  ;;  %v1105_v46 = vrot.slane %v2735_v43, 2  ;;  %v3350_v43 = vsub.s32 0, %v3330_v30 }
 0x12c   : > { %2746 = vtanh.f32 %v674_v44  ;;  %v2549_v47 = vpop.f32.mrb[30].mxu0  ;;  %2592 = vmatmul.mubr.msk.f32.gmra.mrb[22].mxu1 %vm370_vm0, %v2733_v39 }
 0x12d   : > { %v2737_v49 = vpop.eup %2736  ;;  %v689_v51 = vadd.f32 %v2549_v47, %v3215_v50  ;;  %v683_v52 = vpop.f32.mrb[31].mxu0  ;;  %v1106_v53 = vsel %vm1076_vm6, %v1105_v46, %v1104_v45 }
 0x12e   : > { %v2739_v54 = vpop.eup %2738  ;;  %v1109_v55 = vrot.slane %v2737_v49, 7  ;;  %v684_v56 = vadd.f32 %v3215_v50, %v683_v52  ;;  %v1108_v57 = vsel %vm1079_vm7, %v1107_v48, %v1106_v53 }
 0x12f   : > { %2748 = vtanh.f32 %v689_v51  ;;  %2594 = vmatprep.mubr.msk.f32.mxu1 %vm370_vm0, %v2739_v54 }
 0x130   : > { %v1110_v58 = vsel %vm1061_vm1, %v1109_v55, %v2739_v54  ;;  %2750 = vtanh.f32 %v684_v56  ;;  %2595 = vmatmul.mubr.msk.f32.gmra.mrb[24].mxu1 %vm370_vm0, %v2737_v49 }
 0x131   : > { %v2741_v59 = vpop.eup %2740 }
 0x132   : > { %v2743_v60 = vpop.eup %2742  ;;  %v1113_v62 = vrot.slane %v2741_v59, 5 }
 0x133   : > { %v1111_v61 = vrot.slane %v2743_v60, 6  ;;  %2597 = vmatprep.mubr.msk.f32.mxu1 %vm370_vm0, %v2743_v60 }
 0x134   : > { %2598 = vmatmul.mubr.msk.f32.gmra.mrb[26].mxu1 %vm370_vm0, %v2741_v59 }
 0x135   : > { %v2745_v63 = vpop.eup %2744  ;;  %v1112_v50 = vsel %vm1064_vm2, %v1111_v61, %v1110_v58  ;;  %vm2101_vm2 = vcmask 654912  }
 0x136   : > { %v2747_v0 = vpop.eup %2746  ;;  %v1114_v1 = vsel %vm1067_vm3, %v1113_v62, %v1112_v50  ;;  %v1117_v3 = vrot.slane %v2745_v63, 3  ;;  %vm2108_vm3 = vcmask 720512  }
 0x137   : > { %v1115_v2 = vrot.slane %v2747_v0, 4  ;;  %2600 = vmatprep.mubr.msk.f32.mxu1 %vm370_vm0, %v2747_v0 }
 0x138   : > { %2601 = vmatmul.mubr.msk.f32.gmra.mrb[28].mxu1 %vm370_vm0, %v2745_v63 }
 0x139   : > { %v2749_v4 = vpop.eup %2748  ;;  %v1116_v5 = vsel %vm1070_vm4, %v1115_v2, %v1114_v1  ;;  %vm2115_vm4 = vcmask 786112  }
 0x13a   : > { %v2751_v6 = vpop.eup %2750  ;;  %v1118_v7 = vsel %vm1073_vm5, %v1117_v3, %v1116_v5  ;;  %v1121_v9 = vrot.slane %v2749_v4, 1  ;;  %vm2122_vm5 = vcmask 851712  }
 0x13b   : > { %v1119_v8 = vrot.slane %v2751_v6, 2  ;;  %2603 = vmatprep.mubr.msk.f32.mxu1 %vm370_vm0, %v2751_v6 }
 0x13c   : > { %2604 = vmatmul.mubr.msk.f32.gmra.mrb[30].mxu1 %vm370_vm0, %v2749_v4 }
 0x13d   : > { %2617 = vmatprep.mubr.msk.f32.mxu1 %vm370_vm0, %v1108_v57  ;;  %v1120_v10 = vsel %vm1076_vm6, %v1119_v8, %v1118_v7  ;;  %vm2129_vm6 = vcmask 917312  }
 0x13e   : > { %v1122_v11 = vsel %vm1079_vm7, %v1121_v9, %v1120_v10  ;;  %vm2136_vm7 = vcmask 982912  }
 0x140   : > { %2618 = vmatmul.mubr.msk.f32.vlgmr.msra.gmra.mrb[32].mxu1 %vm370_vm0, %v1122_v11  ;;  %vm2094_vm0 = vcmask 589312  }
 0x1d3   : > { %v3313_v12 = vpop.f32.mrb[0].mxu1 }
 0x1d4   : > { %v3315_v13 = vpop.f32.mrb[1].mxu1 }
 0x1d7   : > { %v3317_v14 = vpop.f32.mrb[2].mxu1 }
 0x1d8   : > { %v3319_v15 = vpop.f32.mrb[3].mxu1 }
 0x1db   : > { %v3321_v16 = vpop.f32.mrb[4].mxu1 }
 0x1dc   : > { %v3323_v17 = vpop.f32.mrb[5].mxu1 }
 0x1df   : > { %v3325_v18 = vpop.f32.mrb[6].mxu1 }
 0x1e0   : > { %v3327_v19 = vpop.f32.mrb[7].mxu1 }
 0x1e3   : > { %v2572_v20 = vpop.f32.mrb[8].mxu1 }
 0x1e4   : > { %v930_v21 = vpop.f32.mrb[9].mxu1 }
 0x1e7   : > { %v2575_v22 = vpop.f32.mrb[10].mxu1 }
 0x1e8   : > { %v940_v23 = vpop.f32.mrb[11].mxu1 }
 0x1eb   : > { %v2578_v27 = vpop.f32.mrb[12].mxu1 }
 0x1ec   : > { %v950_v28 = vpop.f32.mrb[13].mxu1 }
 0x1ef   : > { %v3332_v31 = vpop.f32.mrb[14].mxu1 }
 0x1f0   : > { %v960_v32 = vpop.f32.mrb[15].mxu1 }
 0x1f2   : > { %v2616_v35 = vpop.f32.mrb[32].mxu0 }
 0x1f3   : > { %v1203_v36 = vadd.f32 %v2616_v35, %v3337_v33  ;;  %v3343_v37 = vpop.f32.mrb[16].mxu1  ;;  %v1197_v38 = vpop.f32.mrb[33].mxu0 }
 0x1f4   : > { %v1198_v39 = vadd.f32 %v3337_v33, %v1197_v38  ;;  %v3346_v40 = vpop.f32.mrb[17].mxu1 }
 0x1f5   : > { %v1269_v41 = vcombine.high %v1203_v36, %v1203_v36  ;;  %v1276_v42 = vrot.slane %v1203_v36, %v3340_v34 }
 0x1f6   : > { %v1220_v44 = vcombine.high %v1198_v39, %v1198_v39  ;;  %v1227_v45 = vrot.slane %v1198_v39, %v3340_v34 }
 0x1f7   : > { %v1283_v46 = vrot.slane %v1269_v41, %v3340_v34  ;;  %v1284_v47 = vcombine.high %v1276_v42, %v1276_v42  ;;  %v1292_v48 = vrot.slane %v1276_v42, %v3340_v34  ;;  %v3355_v49 = vpop.f32.mrb[18].mxu1 }
 0x1f8   : > { %v1234_v51 = vrot.slane %v1220_v44, %v3340_v34  ;;  %v1235_v52 = vcombine.high %v1227_v45, %v1227_v45  ;;  %v1243_v53 = vrot.slane %v1227_v45, %v3340_v34  ;;  %v3359_v54 = vpop.f32.mrb[19].mxu1 }
 0x1f9   : > { %v1285_v55 = vcombine.high %v1283_v46, %v1283_v46  ;;  %v1299_v56 = vrot.slane %v1283_v46, %v3340_v34  ;;  %v1306_v57 = vrot.slane %v1284_v47, %v3340_v34  ;;  %v1314_v58 = vcombine.high %v1292_v48, %v1292_v48 }
 0x1fa   : > { %v1451_v59 = vrot.slane %v1292_v48, %v3350_v43  ;;  %v1236_v60 = vcombine.high %v1234_v51, %v1234_v51  ;;  %v1250_v61 = vrot.slane %v1234_v51, %v3340_v34  ;;  %v1257_v62 = vrot.slane %v1235_v52, %v3340_v34 }
 0x1fb   : > { %v1313_v63 = vrot.slane %v1285_v55, %v3340_v34  ;;  %v1315_v50 = vcombine.high %v1299_v56, %v1299_v56  ;;  %v1316_v0 = vcombine.high %v1306_v57, %v1306_v57  ;;  %v1455_v1 = vrot.slane %v1306_v57, %v3350_v43  ;;  %v3368_v2 = vpop.f32.mrb[20].mxu1 }
 0x1fc   : > { %v1459_v3 = vrot.slane %v1314_v58, %v3350_v43  ;;  %v1467_v4 = vrot.slane %v1299_v56, %v3350_v43  ;;  %v1584_v5 = vadd.f32 %v1451_v59, %v930_v21  ;;  %v1264_v6 = vrot.slane %v1236_v60, %v3340_v34  ;;  %v3373_v7 = vpop.f32.mrb[21].mxu1 }
 0x1fd   : > { %v1317_v8 = vcombine.high %v1313_v63, %v1313_v63  ;;  %v1463_v9 = vrot.slane %v1316_v0, %v3350_v43  ;;  %v1471_v10 = vrot.slane %v1313_v63, %v3350_v43  ;;  %v1475_v11 = vrot.slane %v1315_v50, %v3350_v43 }
 0x1fe   : > { %v1585_v24 = vadd.f32 %v2572_v20, %v1455_v1  ;;  %v1586_v25 = vadd.f32 %v1459_v3, %v940_v23  ;;  %v1588_v29 = vadd.f32 %v1467_v4, %v950_v28  ;;  %2752 = vtanh.f32 %v1584_v5 }
 0x1ff   : > { %v1479_v35 = vrot.slane %v1317_v8, %v3350_v43  ;;  %v1587_v36 = vadd.f32 %v2575_v22, %v1463_v9  ;;  %v1589_v38 = vadd.f32 %v2578_v27, %v1471_v10  ;;  %v3379_v21 = vadd.f32 %v1475_v11, %v960_v32  ;;  %v3381_v39 = vpop.f32.mrb[22].mxu1 }
 0x200   : > { %v1265_v41 = vcombine.high %v1243_v53, %v1243_v53  ;;  %v1266_v42 = vcombine.high %v1250_v61, %v1250_v61  ;;  %v1267_v44 = vcombine.high %v1257_v62, %v1257_v62  ;;  %v3383_v45 = vpop.f32.mrb[23].mxu1  ;;  %v1268_v46 = vcombine.high %v1264_v6, %v1264_v6 }
 0x201   : > { %v1419_v47 = vrot.slane %v1243_v53, %v3350_v43  ;;  %v1423_v20 = vrot.slane %v1257_v62, %v3350_v43  ;;  %v1435_v22 = vrot.slane %v1250_v61, %v3350_v43  ;;  %2754 = vtanh.f32 %v1585_v24 }
 0x202   : > { %v1427_v23 = vrot.slane %v1265_v41, %v3350_v43  ;;  %v1431_v28 = vrot.slane %v1267_v44, %v3350_v43  ;;  %v1439_v27 = vrot.slane %v1264_v6, %v3350_v43  ;;  %v1443_v32 = vrot.slane %v1266_v42, %v3350_v43 }
 0x203   : > { %v1447_v48 = vrot.slane %v1268_v46, %v3350_v43  ;;  %v3393_v51 = vpop.f32.mrb[24].mxu1  ;;  %2756 = vtanh.f32 %v1586_v25  ;;  %v1576_v52 = vadd.f32 %v1419_v47, %v3315_v13  ;;  %v1577_v53 = vadd.f32 %v3313_v12, %v1423_v20  ;;  %v3407_v13 = vld [vmem:[%s3827_s6] ss:$0 sm:$0xff] }
 0x204   : > { %v1578_v55 = vadd.f32 %v1427_v23, %v3319_v15  ;;  %v3398_v56 = vpop.f32.mrb[25].mxu1  ;;  %2758 = vtanh.f32 %v1588_v29  ;;  %v1579_v57 = vadd.f32 %v3317_v14, %v1431_v28  ;;  %v1580_v58 = vadd.f32 %v1435_v22, %v3323_v17 }
 0x205   : > { %v1581_v59 = vadd.f32 %v3321_v16, %v1439_v27  ;;  %v1582_v60 = vadd.f32 %v1443_v32, %v3327_v19  ;;  %2760 = vtanh.f32 %v1576_v52  ;;  %v3410_v12 = vadd.f32 %v3325_v18, %v1447_v48 }
 0x206   : > { %v1591_v15 = vadd.f32 %v3332_v31, %v1479_v35  ;;  %2762 = vtanh.f32 %v1577_v53 }
 0x207   : > { %v3413_v61 = vpop.f32.mrb[26].mxu1  ;;  %2764 = vtanh.f32 %v1578_v55 }
 0x208   : > { %v2753_v14 = vpop.eup %2752  ;;  %v3415_v62 = vpop.f32.mrb[27].mxu1  ;;  %2766 = vtanh.f32 %v1587_v36 }
 0x209   : > { %v1655_v16 = vmul.f32 %v2753_v14, %v3407_v13  ;;  %2768 = vtanh.f32 %v1589_v38 }
 0x20a   : > { %2770 = vtanh.f32 %v1579_v57 }
 0x20b   : > { %v1704_v17 = vsel %vm1679_vm8, %v1655_v16, 0.0  ;;  %v3419_v19 = vpop.f32.mrb[28].mxu1  ;;  %v2755_v18 = vpop.eup %2754  ;;  %2772 = vtanh.f32 %v1580_v58 }
 0x20c   : > { %1705 = vadd.xlane.f32.xlu0 %v1704_v17  ;;  %v3421_v63 = vpop.f32.mrb[29].mxu1  ;;  %v1656_v5 = vmul.f32 %v2755_v18, %v3407_v13  ;;  %2774 = vtanh.f32 %v1581_v59 }
 0x20d   : > { %v2757_v50 = vpop.eup %2756  ;;  %2776 = vtanh.f32 %v1582_v60 }
 0x20e   : > { %v2759_v31 = vpop.eup %2758  ;;  %v1657_v6 = vmul.f32 %v2757_v50, %v3407_v13  ;;  %v1707_v36 = vsel %vm1679_vm8, %v1656_v5, 0.0  ;;  %2778 = vtanh.f32 %v1591_v15 }
 0x20f   : > { %v3423_v0 = vpop.f32.mrb[30].mxu1  ;;  %v2761_v1 = vpop.eup %2760  ;;  %v1659_v10 = vmul.f32 %v2759_v31, %v3407_v13 }
 0x210   : > { %v3425_v3 = vpop.f32.mrb[31].mxu1  ;;  %v1647_v4 = vmul.f32 %v2761_v1, %v3407_v13  ;;  %v2763_v25 = vpop.eup %2762  ;;  %v1710_v42 = vsel %vm1679_vm8, %v1657_v6, 0.0 }
 0x211   : > { %v2765_v35 = vpop.eup %2764  ;;  %v1716_v47 = vsel %vm1679_vm8, %v1659_v10, 0.0  ;;  %v1648_v28 = vmul.f32 %v2763_v25, %v3407_v13 }
 0x212   : > { %v1680_v8 = vsel %vm1679_vm8, %v1647_v4, 0.0  ;;  %v1649_v48 = vmul.f32 %v2765_v35, %v3407_v13  ;;  %v3445_v52 = vpop.eup %2766 }
 0x213   : > { %v2619_v9 = vpop.f32.mrb[32].mxu1  ;;  %1681 = vadd.xlane.f32.xlu0 %v1680_v8  ;;  %v3449_v59 = vpop.eup %2768 }
 0x214   : > { %v1213_v11 = vadd.f32 %v2619_v9, %v3337_v33  ;;  %v1207_v24 = vpop.f32.mrb[33].mxu1  ;;  %v3454_v17 = vpop.eup %2770 }
 0x215   : > { %v1208_v29 = vadd.f32 %v3337_v33, %v1207_v24  ;;  %v2773_v4 = vpop.eup %2772 }
 0x216   : > { %v1367_v38 = vcombine.high %v1213_v11, %v1213_v11  ;;  %v1374_v41 = vrot.slane %v1213_v11, %v3340_v34  ;;  %v3462_v10 = vpop.eup %2774 }
 0x217   : > { %v1318_v44 = vcombine.high %v1208_v29, %v1208_v29  ;;  %v1325_v46 = vrot.slane %v1208_v29, %v3340_v34  ;;  %1708 = vadd.xlane.f32.xlu0 %v1707_v36  ;;  %v3467_v35 = vpop.eup %2776 }
 0x218   : > { %v1381_v20 = vrot.slane %v1367_v38, %v3340_v34  ;;  %v1382_v23 = vcombine.high %v1374_v41, %v1374_v41  ;;  %v1390_v33 = vrot.slane %v1374_v41, %v3340_v34 }
 0x219   : > { %v1332_v22 = vrot.slane %v1318_v44, %v3340_v34  ;;  %v1333_v27 = vcombine.high %v1325_v46, %v1325_v46  ;;  %v1341_v32 = vrot.slane %v1325_v46, %v3340_v34  ;;  %v2779_v46 = vpop.eup %2778 }
 0x21a   : > { %v1383_v53 = vcombine.high %v1381_v20, %v1381_v20  ;;  %v1397_v55 = vrot.slane %v1381_v20, %v3340_v34  ;;  %v1404_v57 = vrot.slane %v1382_v23, %v3340_v34  ;;  %v1412_v58 = vcombine.high %v1390_v33, %v1390_v33 }
 0x21b   : > { %v1515_v60 = vrot.slane %v1390_v33, %v3350_v43  ;;  %v1334_v15 = vcombine.high %v1332_v22, %v1332_v22  ;;  %v1348_v14 = vrot.slane %v1332_v22, %v3340_v34  ;;  %v1355_v16 = vrot.slane %v1333_v27, %v3340_v34  ;;  %1711 = vadd.xlane.f32.xlu0 %v1710_v42 }
 0x21c   : > { %v1411_v18 = vrot.slane %v1383_v53, %v3340_v34  ;;  %v1413_v50 = vcombine.high %v1397_v55, %v1397_v55  ;;  %v1414_v31 = vcombine.high %v1404_v57, %v1404_v57  ;;  %v1519_v1 = vrot.slane %v1404_v57, %v3350_v43 }
 0x21d   : > { %v1523_v5 = vrot.slane %v1412_v58, %v3350_v43  ;;  %v1531_v6 = vrot.slane %v1397_v55, %v3350_v43  ;;  %v1600_v8 = vadd.f32 %v1515_v60, %v3398_v56  ;;  %v1362_v9 = vrot.slane %v1334_v15, %v3340_v34 }
 0x21e   : > { %v1415_v11 = vcombine.high %v1411_v18, %v1411_v18  ;;  %v1527_v24 = vrot.slane %v1414_v31, %v3350_v43  ;;  %v1535_v25 = vrot.slane %v1411_v18, %v3350_v43  ;;  %v1539_v29 = vrot.slane %v1413_v50, %v3350_v43 }
 0x21f   : > { %v1601_v36 = vadd.f32 %v3393_v51, %v1519_v1  ;;  %v1602_v38 = vadd.f32 %v1523_v5, %v3415_v62  ;;  %v1604_v41 = vadd.f32 %v1531_v6, %v3421_v63  ;;  %2780 = vtanh.f32 %v1600_v8  ;;  %1717 = vadd.xlane.f32.xlu0 %v1716_v47 }
 0x220   : > { %v1543_v34 = vrot.slane %v1415_v11, %v3350_v43  ;;  %v1603_v56 = vadd.f32 %v3413_v61, %v1527_v24  ;;  %v1605_v42 = vadd.f32 %v3419_v19, %v1535_v25  ;;  %v1606_v44 = vadd.f32 %v1539_v29, %v3425_v3 }
 0x221   : > { %v1363_v20 = vcombine.high %v1341_v32, %v1341_v32  ;;  %v1364_v23 = vcombine.high %v1348_v14, %v1348_v14  ;;  %v1365_v33 = vcombine.high %v1355_v16, %v1355_v16  ;;  %v1683_v51 = vsel %vm1679_vm8, %v1648_v28, 0.0 }
 0x222   : > { %v1366_v22 = vcombine.high %v1362_v9, %v1362_v9  ;;  %v1483_v62 = vrot.slane %v1341_v32, %v3350_v43  ;;  %v1487_v63 = vrot.slane %v1355_v16, %v3350_v43  ;;  %v1686_v27 = vsel %vm1679_vm8, %v1649_v48, 0.0 }
 0x223   : > { %2782 = vtanh.f32 %v1603_v56  ;;  %v1491_v61 = vrot.slane %v1363_v20, %v3350_v43  ;;  %v1495_v19 = vrot.slane %v1365_v33, %v3350_v43  ;;  %v1499_v3 = vrot.slane %v1348_v14, %v3350_v43  ;;  %1684 = vadd.xlane.f32.xlu0 %v1683_v51 }
 0x224   : > { %2784 = vtanh.f32 %v1601_v36  ;;  %v1503_v47 = vrot.slane %v1362_v9, %v3350_v43  ;;  %v1507_v53 = vrot.slane %v1364_v23, %v3350_v43  ;;  %v1511_v28 = vrot.slane %v1366_v22, %v3350_v43 }
 0x225   : > { %2786 = vtanh.f32 %v1605_v42  ;;  %v1592_v32 = vadd.f32 %v1483_v62, %v3346_v40  ;;  %v1593_v48 = vadd.f32 %v3343_v37, %v1487_v63  ;;  %v1594_v55 = vadd.f32 %v1491_v61, %v3359_v54 }
 0x226   : > { %2788 = vtanh.f32 %v1606_v44  ;;  %v1595_v57 = vadd.f32 %v3355_v49, %v1495_v19  ;;  %v1596_v58 = vadd.f32 %v1499_v3, %v3373_v7  ;;  %v1597_v60 = vadd.f32 %v3368_v2, %v1503_v47 }
 0x227   : > { %v1598_v15 = vadd.f32 %v1507_v53, %v3383_v45  ;;  %2790 = vtanh.f32 %v1592_v32  ;;  %v1651_v43 = vmul.f32 %v2773_v4, %v3407_v13  ;;  %v1662_v14 = vmul.f32 %v2779_v46, %v3407_v13  ;;  %1687 = vadd.xlane.f32.xlu0 %v1686_v27 }
 0x228   : > { %2792 = vtanh.f32 %v1602_v38  ;;  %v1599_v37 = vadd.f32 %v3381_v39, %v1511_v28  ;;  %v1607_v40 = vadd.f32 %v3423_v0, %v1543_v34  ;;  %v1658_v45 = vmul.f32 %v3445_v52, %v3407_v13 }
 0x229   : > { %v2781_v54 = vpop.eup %2780  ;;  %2794 = vtanh.f32 %v1604_v41  ;;  %v3498_v49 = vsel %vm1679_vm8, %v1662_v14, 0.0  ;;  %v1692_v7 = vsel %vm1679_vm8, %v1651_v43, 0.0  ;;  %v1660_v1 = vmul.f32 %v3449_v59, %v3407_v13 }
 0x22a   : > { %2796 = vtanh.f32 %v1595_v57  ;;  %v1671_v2 = vmul.f32 %v2781_v54, %v3407_v13  ;;  %v1713_v31 = vsel %vm1679_vm8, %v1658_v45, 0.0  ;;  %v1650_v24 = vmul.f32 %v3454_v17, %v3407_v13 }
 0x22b   : > { %2798 = vtanh.f32 %v1596_v58  ;;  %1693 = vadd.xlane.f32.xlu0 %v1692_v7  ;;  %v1719_v29 = vsel %vm1679_vm8, %v1660_v1, 0.0  ;;  %v1652_v20 = vmul.f32 %v3462_v10, %v3407_v13  ;;  %v1653_v53 = vmul.f32 %v3467_v35, %v3407_v13 }
 0x22c   : > { %2800 = vtanh.f32 %v1597_v60  ;;  %v1752_v39 = vsel %vm1679_vm8, %v1671_v2, 0.0  ;;  %v1689_v42 = vsel %vm1679_vm8, %v1650_v24, 0.0  ;;  %v3564_v1 = vstv %s1776_s26 }
 0x22d   : > { %v2783_v16 = vpop.eup %2782  ;;  %2802 = vtanh.f32 %v1598_v15  ;;  %1753 = vadd.xlane.f32.xlu1 %v1752_v39  ;;  %v1695_v47 = vsel %vm1679_vm8, %v1652_v20, 0.0  ;;  %v1698_v60 = vsel %vm1679_vm8, %v1653_v53, 0.0 }
 0x22e   : > { %v2785_v0 = vpop.eup %2784  ;;  %v1674_v18 = vmul.f32 %v2783_v16, %v3407_v13  ;;  %2804 = vtanh.f32 %v1599_v37 }
 0x22f   : > { %v2787_v50 = vpop.eup %2786  ;;  %2806 = vtanh.f32 %v1607_v40  ;;  %1714 = vadd.xlane.f32.xlu0 %v1713_v31  ;;  %v1672_v34 = vmul.f32 %v2785_v0, %v3407_v13 }
 0x230   : > { %v2789_v4 = vpop.eup %2788  ;;  %v3510_v52 = vsel %vm1679_vm8, %v1674_v18, 0.0  ;;  %v1676_v5 = vmul.f32 %v2787_v50, %v3407_v13  ;;  %2808 = vtanh.f32 %v3410_v12 }
 0x231   : > { %v2791_v6 = vpop.eup %2790  ;;  %v1677_v8 = vmul.f32 %v2789_v4, %v3407_v13  ;;  %2810 = vtanh.f32 %v1593_v48  ;;  %v1755_v22 = vsel %vm1679_vm8, %v1672_v34, 0.0 }
 0x232   : > { %v2793_v9 = vpop.eup %2792  ;;  %v1663_v11 = vmul.f32 %v2791_v6, %v3407_v13  ;;  %v3519_v59 = vsel %vm1679_vm8, %v1676_v5, 0.0  ;;  %2812 = vtanh.f32 %v3379_v21 }
 0x233   : > { %v2795_v25 = vpop.eup %2794  ;;  %v3523_v36 = vsel %vm1679_vm8, %v1677_v8, 0.0  ;;  %1720 = vadd.xlane.f32.xlu0 %v1719_v29  ;;  %2814 = vtanh.f32 %v1594_v55  ;;  %v1673_v62 = vmul.f32 %v2793_v9, %v3407_v13 }
 0x234   : > { %v2797_v38 = vpop.eup %2796  ;;  %v1728_v41 = vsel %vm1679_vm8, %v1663_v11, 0.0  ;;  %v1675_v55 = vmul.f32 %v2795_v25, %v3407_v13 }
 0x235   : > { %v2799_v56 = vpop.eup %2798  ;;  %1729 = vadd.xlane.f32.xlu1 %v1728_v41  ;;  %v1666_v12 = vmul.f32 %v2797_v38, %v3407_v13  ;;  %v1758_v48 = vsel %vm1679_vm8, %v1673_v62, 0.0 }
 0x236   : > { %v2801_v17 = vpop.eup %2800  ;;  %v1667_v44 = vmul.f32 %v2799_v56, %v3407_v13  ;;  %v1764_v35 = vsel %vm1679_vm8, %v1675_v55, 0.0 }
 0x237   : > { %v2803_v46 = vpop.eup %2802  ;;  %v1737_v23 = vsel %vm1679_vm8, %v1666_v12, 0.0  ;;  %v1668_v33 = vmul.f32 %v2801_v17, %v3407_v13  ;;  %1690 = vadd.xlane.f32.xlu0 %v1689_v42 }
 0x238   : > { %v2805_v51 = vpop.eup %2804  ;;  %v1740_v21 = vsel %vm1679_vm8, %v1667_v44, 0.0  ;;  %v1669_v63 = vmul.f32 %v2803_v46, %v3407_v13 }
 0x239   : > { %v2807_v27 = vpop.eup %2806  ;;  %1756 = vadd.xlane.f32.xlu1 %v1755_v22  ;;  %v1743_v61 = vsel %vm1679_vm8, %v1668_v33, 0.0  ;;  %v1670_v10 = vmul.f32 %v2805_v51, %v3407_v13 }
 0x23a   : > { %v1746_v19 = vsel %vm1679_vm8, %v1669_v63, 0.0  ;;  %v1678_v3 = vmul.f32 %v2807_v27, %v3407_v13  ;;  %v2809_v32 = vpop.eup %2808 }
 0x23b   : > { %v1749_v28 = vsel %vm1679_vm8, %v1670_v10, 0.0  ;;  %1696 = vadd.xlane.f32.xlu0 %v1695_v47  ;;  %v2811_v58 = vpop.eup %2810  ;;  %v1654_v15 = vmul.f32 %v2809_v32, %v3407_v13 }
 0x23c   : > { %v1773_v57 = vsel %vm1679_vm8, %v1678_v3, 0.0  ;;  %v2813_v43 = vpop.eup %2812  ;;  %v1664_v14 = vmul.f32 %v2811_v58, %v3407_v13 }
 0x23d   : > { %1759 = vadd.xlane.f32.xlu1 %v1758_v48  ;;  %v2815_v37 = vpop.eup %2814  ;;  %v1701_v40 = vsel %vm1679_vm8, %v1654_v15, 0.0  ;;  %v1661_v54 = vmul.f32 %v2813_v43, %v3407_v13 }
 0x23e   : > { %v1731_v2 = vsel %vm1679_vm8, %v1664_v14, 0.0  ;;  %v1665_v7 = vmul.f32 %v2815_v37, %v3407_v13 }
 0x23f   : > { %1699 = vadd.xlane.f32.xlu0 %v1698_v60  ;;  %v1722_v45 = vsel %vm1679_vm8, %v1661_v54, 0.0 }
 0x240   : > { %v1734_v39 = vsel %vm1679_vm8, %v1665_v7, 0.0  ;;  %vm2143_vm8 = vcmask 1048512  }
 0x241   : > { %1765 = vadd.xlane.f32.xlu1 %v1764_v35 }
 0x243   : > { %1702 = vadd.xlane.f32.xlu0 %v1701_v40 }
 0x245   : > { %1732 = vadd.xlane.f32.xlu1 %v1731_v2 }
 0x247   : > { %1723 = vadd.xlane.f32.xlu0 %v1722_v45 }
 0x249   : > { %1735 = vadd.xlane.f32.xlu1 %v1734_v39 }
 0x24b   : > { %1726 = vadd.xlane.f32.xlu0 %v3498_v49 }
 0x24d   : > { %1741 = vadd.xlane.f32.xlu1 %v1740_v21 }
 0x251   : > { %1762 = vadd.xlane.f32.xlu1 %v3510_v52 }
 0x255   : > { %1768 = vadd.xlane.f32.xlu1 %v3519_v59 }
 0x259   : > { %1738 = vadd.xlane.f32.xlu1 %v1737_v23 }
 0x25d   : > { %1744 = vadd.xlane.f32.xlu1 %v1743_v61 }
 0x261   : > { %1747 = vadd.xlane.f32.xlu1 %v1746_v19 }
 0x265   : > { %1750 = vadd.xlane.f32.xlu1 %v1749_v28 }
 0x269   : > { %1771 = vadd.xlane.f32.xlu1 %v3523_v36 }
 0x26d   : > { %1774 = vadd.xlane.f32.xlu1 %v1773_v57 }
 0x299   : > { %v1706_v13 = vpop.xlane.xlu0 %1705 }
 0x29a   : > { %v1786_v52 = vadd.f32 %v3564_v1, %v1706_v13 }
 0x29c   : > { %v2386_v24 = vmul.f32 -1.442695, %v1786_v52 }
 0x29e   : > { %2816 = vpow2.f32 %v2386_v24 }
 0x2a0   : > { %v1682_v16 = vpop.xlane.xlu0 %1681 }
 0x2a1   : > { %v1778_v6 = vadd.f32 %v3564_v1, %v1682_v16 }
 0x2a3   : > { %v2378_v59 = vmul.f32 -1.442695, %v1778_v6 }
 0x2a4   : > { %v1709_v0 = vpop.xlane.xlu0 %1708 }
 0x2a5   : > { %v1787_v9 = vadd.f32 %v3564_v1, %v1709_v0  ;;  %2818 = vpow2.f32 %v2378_v59 }
 0x2a7   : > { %v2387_v36 = vmul.f32 -1.442695, %v1787_v9 }
 0x2a8   : > { %v1712_v18 = vpop.xlane.xlu0 %1711  ;;  %v2817_v21 = vpop.eup %2816 }
 0x2a9   : > { %v1788_v11 = vadd.f32 %v3564_v1, %v1712_v18  ;;  %2820 = vpow2.f32 %v2387_v36  ;;  %v1914_v53 = vadd.f32 1.0, %v2817_v21  ;;  %v3594_v36 = vand.u32 127, %v1224_v26 }
 0x2ab   : > { %v2388_v34 = vmul.f32 -1.442695, %v1788_v11 }
 0x2ac   : > { %v1718_v50 = vpop.xlane.xlu0 %1717 }
 0x2ad   : > { %v1790_v25 = vadd.f32 %v3564_v1, %v1718_v50  ;;  %2822 = vpow2.f32 %v2388_v34 }
 0x2af   : > { %v2390_v56 = vmul.f32 -1.442695, %v1790_v25  ;;  %v2819_v61 = vpop.eup %2818 }
 0x2b0   : > { %v1685_v31 = vpop.xlane.xlu0 %1684  ;;  %v1906_v32 = vadd.f32 1.0, %v2819_v61 }
 0x2b1   : > { %v1779_v38 = vadd.f32 %v3564_v1, %v1685_v31  ;;  %2824 = vpow2.f32 %v2390_v56 }
 0x2b3   : > { %v2379_v17 = vmul.f32 -1.442695, %v1779_v38  ;;  %v2821_v19 = vpop.eup %2820 }
 0x2b4   : > { %v1688_v49 = vpop.xlane.xlu0 %1687  ;;  %v1915_v57 = vadd.f32 1.0, %v2821_v19 }
 0x2b5   : > { %v1780_v44 = vadd.f32 %v3564_v1, %v1688_v49  ;;  %2826 = vpow2.f32 %v2379_v17 }
 0x2b7   : > { %v2380_v51 = vmul.f32 -1.442695, %v1780_v44  ;;  %v2823_v47 = vpop.eup %2822 }
 0x2b8   : > { %v1694_v4 = vpop.xlane.xlu0 %1693  ;;  %v1916_v60 = vadd.f32 1.0, %v2823_v47 }
 0x2b9   : > { %v1782_v46 = vadd.f32 %v3564_v1, %v1694_v4  ;;  %2828 = vpow2.f32 %v2380_v51  ;;  %v2089_v51 = vadd.s32 4294967232, %v3594_v36 }
 0x2ba   : > { %v1754_v5 = vpop.xlane.xlu1 %1753 }
 0x2bb   : > { %v1802_v33 = vadd.f32 %v3564_v1, %v1754_v5  ;;  %v2382_v62 = vmul.f32 -1.442695, %v1782_v46  ;;  %v2825_v55 = vpop.eup %2824 }
 0x2bc   : > { %v1715_v8 = vpop.xlane.xlu0 %1714  ;;  %v1918_v37 = vadd.f32 1.0, %v2825_v55 }
 0x2bd   : > { %v1789_v22 = vadd.f32 %v3564_v1, %v1715_v8  ;;  %v2402_v10 = vmul.f32 -1.442695, %v1802_v33  ;;  %2830 = vpow2.f32 %v2382_v62 }
 0x2bf   : > { %v2389_v3 = vmul.f32 -1.442695, %v1789_v22  ;;  %2832 = vpow2.f32 %v2402_v10  ;;  %v2827_v58 = vpop.eup %2826 }
 0x2c0   : > { %v1721_v29 = vpop.xlane.xlu0 %1720  ;;  %v1907_v2 = vadd.f32 1.0, %v2827_v58 }
 0x2c1   : > { %2834 = vpow2.f32 %v2389_v3  ;;  %v1791_v40 = vadd.f32 %v3564_v1, %v1721_v29 }
 0x2c2   : > { %v1730_v41 = vpop.xlane.xlu1 %1729  ;;  %2836 = vrcp.f32 %v1914_v53  ;;  %v3613_v53 = vsub.s32 %v2089_v51, %v3330_v30 }
 0x2c3   : > { %2838 = vrcp.f32 %v1906_v32  ;;  %v1794_v45 = vadd.f32 %v3564_v1, %v1730_v41  ;;  %v2829_v16 = vpop.eup %2828  ;;  %v2391_v0 = vmul.f32 -1.442695, %v1791_v40  ;;  %v3617_v32 = vsub.s32 %v3594_v36, %v3330_v30 }
 0x2c4   : > { %v1691_v12 = vpop.xlane.xlu0 %1690  ;;  %2840 = vrcp.f32 %v1915_v57  ;;  %v1908_v5 = vadd.f32 1.0, %v2829_v16  ;;  %v2047_v40 = vadd.s32 4294967280, %v3594_v36 }
 0x2c5   : > { %v1781_v28 = vadd.f32 %v3564_v1, %v1691_v12  ;;  %2842 = vrcp.f32 %v1916_v60  ;;  %v2394_v4 = vmul.f32 -1.442695, %v1794_v45  ;;  %v3620_v60 = vadd.s32 4294967224, %v3594_v36 }
 0x2c6   : > { %v1757_v42 = vpop.xlane.xlu1 %1756 }
 0x2c7   : > { %v2381_v35 = vmul.f32 -1.442695, %v1781_v28  ;;  %v2831_v50 = vpop.eup %2830  ;;  %v1803_v31 = vadd.f32 %v3564_v1, %v1757_v42 }
 0x2c8   : > { %v1697_v20 = vpop.xlane.xlu0 %1696  ;;  %v1910_v8 = vadd.f32 1.0, %v2831_v50 }
 0x2c9   : > { %v1783_v15 = vadd.f32 %v3564_v1, %v1697_v20  ;;  %2844 = vpow2.f32 %v2381_v35  ;;  %v2833_v52 = vpop.eup %2832  ;;  %v2403_v59 = vmul.f32 -1.442695, %v1803_v31 }
 0x2ca   : > { %v1760_v23 = vpop.xlane.xlu1 %1759  ;;  %2846 = vrcp.f32 %v1918_v37  ;;  %v1930_v38 = vadd.f32 1.0, %v2833_v52  ;;  %v2040_v37 = vadd.s32 4294967288, %v3594_v36 }
 0x2cb   : > { %v2383_v39 = vmul.f32 -1.442695, %v1783_v15  ;;  %2848 = vrcp.f32 %v1907_v2  ;;  %v2835_v6 = vpop.eup %2834  ;;  %v1804_v9 = vadd.f32 %v3564_v1, %v1760_v23 }
 0x2cc   : > { %v1700_v63 = vpop.xlane.xlu0 %1699  ;;  %v3588_v24 = vpop.eup %2836  ;;  %v1917_v56 = vadd.f32 1.0, %v2835_v6  ;;  %v2054_v6 = vadd.s32 4294967272, %v3594_v36 }
 0x2cd   : > { %v1784_v14 = vadd.f32 %v3564_v1, %v1700_v63  ;;  %2850 = vpow2.f32 %v2383_v39  ;;  %v3591_v29 = vpop.eup %2838  ;;  %v2404_v42 = vmul.f32 -1.442695, %v1804_v9 }
 0x2ce   : > { %v3576_v27 = vpop.xlane.xlu1 %1765  ;;  %v3597_v34 = vpop.eup %2840 }
 0x2cf   : > { %v2384_v13 = vmul.f32 -1.442695, %v1784_v14  ;;  %v1806_v12 = vadd.f32 %v3564_v1, %v3576_v27  ;;  %v3601_v17 = vpop.eup %2842 }
 0x2d0   : > { %v1703_v43 = vpop.xlane.xlu0 %1702 }
 0x2d1   : > { %v1785_v7 = vadd.f32 %v3564_v1, %v1703_v43  ;;  %2852 = vpow2.f32 %v2384_v13  ;;  %v2406_v21 = vmul.f32 -1.442695, %v1806_v12 }
 0x2d2   : > { %v1733_v48 = vpop.xlane.xlu1 %1732  ;;  %2854 = vpow2.f32 %v2391_v0 }
 0x2d3   : > { %v2385_v49 = vmul.f32 -1.442695, %v1785_v7  ;;  %v1795_v25 = vadd.f32 %v3564_v1, %v1733_v48  ;;  %v2845_v46 = vpop.eup %2844  ;;  %v2061_v7 = vadd.s32 4294967264, %v3594_v36 }
 0x2d4   : > { %v1724_v20 = vpop.xlane.xlu0 %1723  ;;  %v3604_v33 = vpop.eup %2846  ;;  %v1909_v27 = vadd.f32 1.0, %v2845_v46 }
 0x2d5   : > { %2856 = vpow2.f32 %v2385_v49  ;;  %v2395_v26 = vmul.f32 -1.442695, %v1795_v25  ;;  %v3607_v62 = vpop.eup %2848  ;;  %v1792_v43 = vadd.f32 %v3564_v1, %v1724_v20  ;;  %v3658_v20 = vsub.s32 %v2054_v6, %v3330_v30 }
 0x2d6   : > { %v1736_v54 = vpop.xlane.xlu1 %1735  ;;  %2858 = vpow2.f32 %v2394_v4 }
 0x2d7   : > { %v1796_v41 = vadd.f32 %v3564_v1, %v1736_v54  ;;  %2860 = vrcp.f32 %v1908_v5  ;;  %v2851_v63 = vpop.eup %2850  ;;  %v2392_v31 = vmul.f32 -1.442695, %v1792_v43  ;;  %v3642_v5 = vsub.s32 %v2040_v37, %v3330_v30 }
 0x2d8   : > { %2862 = vrcp.f32 %v1910_v8  ;;  %v1911_v48 = vadd.f32 1.0, %v2851_v63  ;;  %v1727_v55 = vpop.xlane.xlu0 %1726 }
 0x2d9   : > { %2864 = vpow2.f32 %v2403_v59  ;;  %v2396_v22 = vmul.f32 -1.442695, %v1796_v41  ;;  %v1793_v39 = vadd.f32 %v3564_v1, %v1727_v55 }
 0x2da   : > { %v1742_v18 = vpop.xlane.xlu1 %1741  ;;  %2866 = vrcp.f32 %v1930_v38  ;;  %v3652_v38 = vsub.s32 %v2061_v7, %v3330_v30 }
 0x2db   : > { %v1798_v23 = vadd.f32 %v3564_v1, %v1742_v18  ;;  %2868 = vrcp.f32 %v1917_v56  ;;  %v2853_v10 = vpop.eup %2852  ;;  %v2393_v59 = vmul.f32 -1.442695, %v1793_v39 }
 0x2dc   : > { %2870 = vpow2.f32 %v2404_v42  ;;  %v3610_v47 = vpop.eup %2854  ;;  %v1912_v15 = vadd.f32 1.0, %v2853_v10  ;;  %v2068_v42 = vadd.s32 4294967256, %v3594_v36 }
 0x2dd   : > { %2872 = vpow2.f32 %v2395_v26  ;;  %v2398_v19 = vmul.f32 -1.442695, %v1798_v23  ;;  %v1919_v37 = vadd.f32 1.0, %v3610_v47 }
 0x2de   : > { %v3586_v11 = vpop.xlane.xlu1 %1762  ;;  %2874 = vpow2.f32 %v2396_v22  ;;  %v2075_v22 = vadd.s32 4294967248, %v3594_v36  ;;  %v3670_v55 = vsub.s32 %v2068_v42, %v3330_v30 }
 0x2df   : > { %v2857_v28 = vpop.eup %2856  ;;  %2876 = vpow2.f32 %v2406_v21  ;;  %v1805_v0 = vadd.f32 %v3564_v1, %v3586_v11  ;;  %v3649_v11 = vsub.s32 %v2047_v40, %v3330_v30  ;;  %v2082_v21 = vadd.s32 4294967240, %v3594_v36 }
 0x2e0   : > { %v2859_v58 = vpop.eup %2858  ;;  %2878 = vrcp.f32 %v1909_v27  ;;  %v1913_v45 = vadd.f32 1.0, %v2857_v28  ;;  %v2039_v28 = vrot.slane %v3591_v29, %v3617_v32  ;;  %v3676_v29 = vsub.s32 %v2075_v22, %v3330_v30 }
 0x2e1   : > { %v3623_v14 = vpop.eup %2860  ;;  %2880 = vpow2.f32 %v2398_v19  ;;  %v1922_v16 = vadd.f32 1.0, %v2859_v58  ;;  %v2405_v41 = vmul.f32 -1.442695, %v1805_v0 }
 0x2e2   : > { %v1769_v44 = vpop.xlane.xlu1 %1768  ;;  %v3628_v2 = vpop.eup %2862 }
 0x2e3   : > { %v3632_v13 = vpop.eup %2864  ;;  %v1807_v49 = vadd.f32 %v3564_v1, %v1769_v44 }
 0x2e4   : > { %v3636_v50 = vpop.eup %2866 }
 0x2e5   : > { %v3639_v52 = vpop.eup %2868  ;;  %v2407_v44 = vmul.f32 -1.442695, %v1807_v49 }
 0x2e6   : > { %v1739_v61 = vpop.xlane.xlu1 %1738  ;;  %v3646_v9 = vpop.eup %2870 }
 0x2e7   : > { %v1797_v3 = vadd.f32 %v3564_v1, %v1739_v61  ;;  %v2873_v25 = vpop.eup %2872  ;;  %v2044_v61 = vrot.slane %v3607_v62, %v3642_v5 }
 0x2e8   : > { %v2875_v12 = vpop.eup %2874  ;;  %v1923_v63 = vadd.f32 1.0, %v2873_v25 }
 0x2e9   : > { %v2397_v57 = vmul.f32 -1.442695, %v1797_v3  ;;  %v3655_v26 = vpop.eup %2876  ;;  %v1924_v10 = vadd.f32 1.0, %v2875_v12 }
 0x2ea   : > { %v1745_v35 = vpop.xlane.xlu1 %1744  ;;  %v2879_v51 = vpop.eup %2878  ;;  %v1934_v22 = vadd.f32 1.0, %v3655_v26  ;;  %v2093_v26 = vrot.slane %v3588_v24, %v3613_v53 }
 0x2eb   : > { %v1799_v54 = vadd.f32 %v3564_v1, %v1745_v35  ;;  %2882 = vpow2.f32 %v2397_v57  ;;  %v2881_v27 = vpop.eup %2880 }
 0x2ec   : > { %2884 = vrcp.f32 %v1911_v48  ;;  %v2051_v48 = vrot.slane %v3623_v14, %v3649_v11  ;;  %v3679_v14 = vsub.s32 %v2082_v21, %v3330_v30  ;;  %v1926_v7 = vadd.f32 1.0, %v2881_v27 }
 0x2ed   : > { %v2399_v18 = vmul.f32 -1.442695, %v1799_v54  ;;  %2886 = vrcp.f32 %v1912_v15  ;;  %v2058_v15 = vrot.slane %v2879_v51, %v3658_v20  ;;  %v2046_v54 = vsel %vm2045_vm9, %v2044_v61, %v2039_v28 }
 0x2ee   : > { %v1748_v4 = vpop.xlane.xlu1 %1747  ;;  %v3700_v21 = vsub.s32 %v3620_v60, %v3330_v30 }
 0x2ef   : > { %2888 = vpow2.f32 %v2399_v18  ;;  %v1800_v8 = vadd.f32 %v3564_v1, %v1748_v4 }
 0x2f0   : > { %2890 = vrcp.f32 %v1913_v45  ;;  %v2100_v24 = vrot.slane %v3597_v34, %v3700_v21 }
 0x2f1   : > { %2892 = vrcp.f32 %v1922_v16  ;;  %v2400_v56 = vmul.f32 -1.442695, %v1800_v8  ;;  %v2053_v16 = vsel %vm2052_vm10, %v2051_v48, %v2046_v54  ;;  %v2065_v8 = vrot.slane %v3628_v2, %v3652_v38 }
 0x2f2   : > { %2894 = vpow2.f32 %v2392_v31  ;;  %v1751_v46 = vpop.xlane.xlu1 %1750  ;;  %v2060_v31 = vsel %vm2059_vm11, %v2058_v15, %v2053_v16  ;;  %v2103_v2 = vadd.s32 4294967216, %v3594_v36 }
 0x2f3   : > { %2896 = vpow2.f32 %v2400_v56  ;;  %v1801_v23 = vadd.f32 %v3564_v1, %v1751_v46 }
 0x2f4   : > { %2898 = vpow2.f32 %v2393_v59  ;;  %v3708_v48 = vsub.s32 %v2103_v2, %v3330_v30 }
 0x2f5   : > { %2900 = vpow2.f32 %v2405_v41  ;;  %v2401_v19 = vmul.f32 -1.442695, %v1801_v23  ;;  %v2883_v3 = vpop.eup %2882  ;;  %v1931_v41 = vadd.f32 1.0, %v3632_v13 }
 0x2f6   : > { %2902 = vpow2.f32 %v2407_v44  ;;  %v1772_v57 = vpop.xlane.xlu1 %1771  ;;  %v2885_v58 = vpop.eup %2884  ;;  %v1925_v43 = vadd.f32 1.0, %v2883_v3  ;;  %v2067_v44 = vsel %vm2066_vm12, %v2065_v8, %v2060_v31 }
 0x2f7   : > { %2904 = vpow2.f32 %v2401_v19  ;;  %v1808_v62 = vadd.f32 %v3564_v1, %v1772_v57  ;;  %v2887_v35 = vpop.eup %2886  ;;  %v2072_v49 = vrot.slane %v2885_v58, %v3670_v55  ;;  %v2117_v57 = vadd.s32 4294967200, %v3594_v36 }
 0x2f8   : > { %2906 = vrcp.f32 %v1923_v63  ;;  %v2079_v59 = vrot.slane %v2887_v35, %v3676_v29  ;;  %v2110_v63 = vadd.s32 4294967208, %v3594_v36 }
 0x2f9   : > { %v2889_v40 = vpop.eup %2888  ;;  %2908 = vrcp.f32 %v1924_v10  ;;  %v2408_v45 = vmul.f32 -1.442695, %v1808_v62  ;;  %v2074_v51 = vsel %vm2073_vm13, %v2072_v49, %v2067_v44 }
 0x2fa   : > { %v2891_v39 = vpop.eup %2890  ;;  %2910 = vrcp.f32 %v1925_v43  ;;  %v1927_v0 = vadd.f32 1.0, %v2889_v40  ;;  %v1775_v47 = vpop.xlane.xlu1 %1774  ;;  %v2081_v27 = vsel %vm2080_vm14, %v2079_v59, %v2074_v51 }
 0x2fb   : > { %v3683_v18 = vpop.eup %2892  ;;  %2912 = vpow2.f32 %v2408_v45  ;;  %v1809_v4 = vadd.f32 %v3564_v1, %v1775_v47  ;;  %v2086_v56 = vrot.slane %v2891_v39, %v3679_v14  ;;  %v1932_v1 = vadd.f32 1.0, %v3646_v9 }
 0x2fc   : > { %v2895_v6 = vpop.eup %2894  ;;  %2914 = vrcp.f32 %v1919_v37  ;;  %v3715_v37 = vsub.s32 %v2110_v63, %v3330_v30  ;;  %v2148_v16 = vrot.slane %v3683_v18, %v3617_v32  ;;  %v2187_v63 = vrot.slane %v3636_v50, %v3613_v53 }
 0x2fd   : > { %v2897_v25 = vpop.eup %2896  ;;  %2916 = vrcp.f32 %v1926_v7  ;;  %v2409_v12 = vmul.f32 -1.442695, %v1809_v4  ;;  %v2088_v61 = vsel %vm2087_vm15, %v2086_v56, %v2081_v27  ;;  %v1920_v10 = vadd.f32 1.0, %v2895_v6 }
 0x2fe   : > { %v2899_v42 = vpop.eup %2898  ;;  %2918 = vrcp.f32 %v1927_v0  ;;  %v1928_v46 = vadd.f32 1.0, %v2897_v25  ;;  %v2095_v62 = vsel %vm2094_vm0, %v2093_v26, %v2088_v61  ;;  %v2124_v4 = vadd.s32 4294967192, %v3594_v36 }
 0x2ff   : > { %v2901_v23 = vpop.eup %2900  ;;  %2920 = vpow2.f32 %v2409_v12  ;;  %v1921_v58 = vadd.f32 1.0, %v2899_v42  ;;  %v2102_v0 = vsel %vm2101_vm2, %v2100_v24, %v2095_v62 }
 0x300   : > { %v2903_v13 = vpop.eup %2902  ;;  %2922 = vrcp.f32 %v1928_v46  ;;  %v1933_v3 = vadd.f32 1.0, %v2901_v23  ;;  %v2138_v46 = vadd.s32 4294967176, %v3594_v36 }
 0x301   : > { %v2905_v9 = vpop.eup %2904  ;;  %2924 = vrcp.f32 %v1931_v41  ;;  %v1935_v43 = vadd.f32 1.0, %v2903_v13  ;;  %v2131_v41 = vadd.s32 4294967184, %v3594_v36 }
 0x302   : > { %v2907_v19 = vpop.eup %2906  ;;  %2926 = vrcp.f32 %v1932_v1  ;;  %v1929_v28 = vadd.f32 1.0, %v2905_v9 }
 0x303   : > { %v2909_v60 = vpop.eup %2908  ;;  %2928 = vrcp.f32 %v1934_v22  ;;  %v2152_v40 = vrot.slane %v2907_v19, %v3642_v5  ;;  %v2107_v5 = vrot.slane %v3601_v17, %v3708_v48  ;;  %v2114_v17 = vrot.slane %v3639_v52, %v3715_v37 }
 0x304   : > { %v2911_v15 = vpop.eup %2910  ;;  %2930 = vrcp.f32 %v1929_v28  ;;  %v2157_v7 = vrot.slane %v2909_v60, %v3649_v11  ;;  %v2120_v11 = vsub.s32 %v2117_v57, %v3330_v30  ;;  %v2127_v52 = vsub.s32 %v2124_v4, %v3330_v30 }
 0x305   : > { %v2913_v35 = vpop.eup %2912  ;;  %2932 = vrcp.f32 %v1920_v10  ;;  %v2162_v34 = vrot.slane %v2911_v15, %v3658_v20  ;;  %v2153_v49 = vsel %vm2045_vm9, %v2152_v40, %v2148_v16  ;;  %v2109_v6 = vsel %vm2108_vm3, %v2107_v5, %v2102_v0 }
 0x306   : > { %v3718_v54 = vpop.eup %2914  ;;  %2934 = vrcp.f32 %v1933_v3  ;;  %v1936_v45 = vadd.f32 1.0, %v2913_v35  ;;  %v2158_v18 = vsel %vm2052_vm10, %v2157_v7, %v2153_v49  ;;  %v2116_v1 = vsel %vm2115_vm4, %v2114_v17, %v2109_v6 }
 0x307   : > { %v2917_v39 = vpop.eup %2916  ;;  %2936 = vrcp.f32 %v1921_v58  ;;  %v2163_v59 = vsel %vm2059_vm11, %v2162_v34, %v2158_v18  ;;  %v2134_v22 = vsub.s32 %v2131_v41, %v3330_v30  ;;  %v2141_v10 = vsub.s32 %v2138_v46, %v3330_v30 }
 0x308   : > { %v2919_v47 = vpop.eup %2918  ;;  %2938 = vrcp.f32 %v1935_v43  ;;  %v2167_v12 = vrot.slane %v2917_v39, %v3652_v38 }
 0x309   : > { %v2921_v31 = vpop.eup %2920  ;;  %2940 = vrcp.f32 %v1936_v45  ;;  %v2172_v25 = vrot.slane %v2919_v47, %v3670_v55  ;;  %v2121_v55 = vrot.slane %v3604_v33, %v2120_v11 }
 0x30a   : > { %v2923_v32 = vpop.eup %2922  ;;  %v1937_v20 = vadd.f32 1.0, %v2921_v31  ;;  %v2168_v2 = vsel %vm2066_vm12, %v2167_v12, %v2163_v59 }
 0x30b   : > { %v2925_v8 = vpop.eup %2924  ;;  %v2177_v42 = vrot.slane %v2923_v32, %v3676_v29  ;;  %v2173_v38 = vsel %vm2073_vm13, %v2172_v25, %v2168_v2  ;;  %v2123_v36 = vsel %vm2122_vm5, %v2121_v55, %v2116_v1 }
 0x30c   : > { %v2927_v56 = vpop.eup %2926  ;;  %2942 = vrcp.f32 %v1937_v20  ;;  %v2192_v9 = vrot.slane %v2925_v8, %v3700_v21 }
 0x30d   : > { %v2929_v44 = vpop.eup %2928  ;;  %v2178_v27 = vsel %vm2080_vm14, %v2177_v42, %v2173_v38  ;;  %v2197_v53 = vrot.slane %v2927_v56, %v3708_v48 }
 0x30e   : > { %v2931_v23 = vpop.eup %2930  ;;  %v2207_v60 = vrot.slane %v2929_v44, %v2120_v11 }
 0x30f   : > { %v2933_v51 = vpop.eup %2932  ;;  %v2182_v29 = vrot.slane %v2931_v23, %v3679_v14  ;;  %v2128_v14 = vrot.slane %v3718_v54, %v2127_v52 }
 0x310   : > { %v2935_v13 = vpop.eup %2934  ;;  %v2135_v57 = vrot.slane %v2933_v51, %v2134_v22 }
 0x311   : > { %v2937_v33 = vpop.eup %2936  ;;  %v2183_v61 = vsel %vm2087_vm15, %v2182_v29, %v2178_v27  ;;  %v2202_v3 = vrot.slane %v2935_v13, %v3715_v37  ;;  %v2130_v28 = vsel %vm2129_vm6, %v2128_v14, %v2123_v36 }
 0x312   : > { %v2939_v19 = vpop.eup %2938  ;;  %v2188_v50 = vsel %vm2094_vm0, %v2187_v63, %v2183_v61  ;;  %v2142_v30 = vrot.slane %v2937_v33, %v2141_v10  ;;  %v2137_v62 = vsel %vm2136_vm7, %v2135_v57, %v2130_v28 }
 0x313   : > { %v2941_v26 = vpop.eup %2940  ;;  %v2193_v21 = vsel %vm2101_vm2, %v2192_v9, %v2188_v50  ;;  %v2212_v48 = vrot.slane %v2939_v19, %v2127_v52 }
 0x314   : > { %v2198_v58 = vsel %vm2108_vm3, %v2197_v53, %v2193_v21  ;;  %v2217_v24 = vrot.slane %v2941_v26, %v2134_v22  ;;  %v2144_v7 = vsel %vm2143_vm8, %v2142_v30, %v2137_v62 }
 0x315   : > { %v2203_v15 = vsel %vm2115_vm4, %v2202_v3, %v2198_v58 }
 0x316   : > { %v2943_v43 = vpop.eup %2942  ;;  %v2208_v35 = vsel %vm2122_vm5, %v2207_v60, %v2203_v15 }
 0x317   : > { %v2213_v37 = vsel %vm2129_vm6, %v2212_v48, %v2208_v35  ;;  %v2222_v40 = vrot.slane %v2943_v43, %v2141_v10 }
 0x318   : > { %v2218_v54 = vsel %vm2136_vm7, %v2217_v24, %v2213_v37 }
 0x319   : > { %v2223_v45 = vsel %vm2143_vm8, %v2222_v40, %v2218_v54 }
 0x31a   : > { %v2224_v39 = vsel %vm1061_vm1, %v2223_v45, %v2144_v7 }
 0x31b   : > { %2226 = vst [vmem:[%s312_s11] sm:$0x3] %v2224_v39 }
 0x31c   : > { %2957 = shalt.err (!%p2954_p3)
}
 0x31d   : > { %s2958_s23 = scalar_lea.hbm %s3776_s18, 32  ;;  %s2962_s27 = scalar_lea.hbm %s3829_s8, 64 }
 0x31e   : > { %p2959_p4 = scmp.ne.s32.totalorder %s3776_s18, %s2958_s23  ;;  %p2963_p9 = scmp.lt.u32.totalorder %s3776_s18, %s3829_s8 }
 0x31f   : > { %p2964_p10 = scmp.lt.u32.totalorder %s2962_s27, %s2958_s23  ;;  %p2966_p12 = scmp.lt.u32.totalorder %s2958_s23, %s3776_s18 }
 0x320   : > { %p2960_p7 = pnand %p2959_p4, %p3093_p5 }
 0x321   : > { %p2965_p11 = por %p2964_p10, %p2963_p9 }
 0x322   : > { %p2961_p8 = pneg %p2960_p7 }
 0x323   : > { %p2967_p13 = por %p2966_p12, %p2965_p11 }
 0x325   : > { %p2968_p0 = pnand %p2967_p13, %p2961_p8 }
 0x327   : > { %2971 = shalt.err (!%p2968_p0)
}
 0x328   : > { %2648 = dma.vmem_to_hbm [thread:$0]  (%p3093_p5), %s3778_s13, 32, %s3776_s18, %s2228_s19  }
 0x329 PF: > { %p2654_p1 = scmp.ge.s32.totalorder %s3006_s10, 2  ;;  %s2253_s7 = sand.u32 1, %s2994_s29  }
 0x32a   : > { %s2254_s14 = scalar_lea.sflag [#allocation4], %s2253_s7 }
 0x32b   : > { %p2651_p2 = pnand %p2654_p1, %p3097_p6 }
 0x32d   : > { %2989 = dma.done.wait (!%p2651_p2), %s2254_s14, 32  }
 0x32e   : > { %2991 = vsyncadd (!%p2651_p2), %s2254_s14, 4294967264  ;;  %p19_p3 = scmp.ge.s32.totalorder %s3081_s12, 4   ;;  %s3832_s29 = smov %s2998_s30 }
 0x32f   : > { %s3833_s30 = smov %s3002_s9  ;;  %s3834_s9 = smov %s3091_s15 }
 0x330   : > { %s3835_s10 = smov %s3081_s12  ;;  %21 = sbr.rel (!%p19_p3) target bundleno = 5 (0x5), region = 87 }
 0x337   :  { %2259 = vsyncpa [#allocation4], 1 }
 0x338   :  { %2261 = vsyncpa [#allocation4 + $0x1], 1 }

</bundles_post_ra>
